<compile_context>
chip_gen: v5e
topology: v5e:2x2
jax: 0.10.0
libtpu: 0.0.40
codegen_flags: <defaults>
</compile_context>

<pallas_src>
import functools
from math import sqrt

import numpy as np
import jax
import jax.numpy as jnp
from jax import lax
from jax.experimental import pallas as pl
from jax.experimental.pallas import tpu as pltpu


# ----------------------------- Fused Pallas kernel ---------------------------

def _attn_layer_kernel(q_ref, k_ref, v_ref, q1_ref, k1_ref,
                       wqs_ref, bqs_ref,
                       wk_ref, bk_ref,
                       wv_ref, bv_ref,
                       wq1_ref, bq1_ref,
                       wk1_ref, bk1_ref,
                       wo_ref, bo_ref,
                       out_ref, series_ref, prior_ref, sigma_ref,
                       *, n_heads, e_k, e_v, mxu_dtype, approx_recip):
    H, Ek, Ev = n_heads, e_k, e_v
    f32 = jnp.float32
    ct_last = (((1,), (1,)), ((), ()))            # contract last dims: A @ B^T

    # Activations: cast once to the MXU operand dtype (bf16 by default).
    x_q = q_ref[0].astype(mxu_dtype)              # (Lt, Dm)
    x_k = k_ref[0].astype(mxu_dtype)              # (S,  Dm)
    x_v = v_ref[0].astype(mxu_dtype)              # (S,  Dm)
    x_q1 = q1_ref[0].astype(mxu_dtype)            # (Lt, Dm)
    x_k1 = k1_ref[0].astype(mxu_dtype)            # (S,  Dm)

    # Query-side projections (row-major; query + sigma fused into one GEMM,
    # 1/sqrt(Ek) is already folded into W_q / W_q1 at pack time).
    qs = lax.dot_general(x_q, wqs_ref[...], ct_last,
                         preferred_element_type=f32) + bqs_ref[...]    # (Lt, H*Ek+H)
    q1 = lax.dot_general(x_q1, wq1_ref[...], ct_last,
                         preferred_element_type=f32) + bq1_ref[...]    # (Lt, H*Ek)

    # Key/value projections are produced feature-major (W @ X^T) so the
    # per-head split is a cheap sublane slice and no transpose is ever needed.
    k_t = lax.dot_general(wk_ref[...], x_k, ct_last,
                          preferred_element_type=f32) + bk_ref[...]    # (H*Ek, S)
    k1_t = lax.dot_general(wk1_ref[...], x_k1, ct_last,
                           preferred_element_type=f32) + bk1_ref[...]  # (H*Ek, S)
    v_t = lax.dot_general(wv_ref[...], x_v, ct_last,
                          preferred_element_type=f32) + bv_ref[...]    # (H*Ev, S)

    # Cast projected activations to the MXU dtype once (not per head slice).
    q_m = qs[:, :H * Ek].astype(mxu_dtype)
    q1_m = q1.astype(mxu_dtype)
    k_m = k_t.astype(mxu_dtype)
    k1_m = k1_t.astype(mxu_dtype)
    v_m = v_t.astype(mxu_dtype)
    wo = wo_ref[...]                              # (H*Ev, Dm), resident weight

    def softmax(s):                               # fp32 softmax along lanes (S)
        s = s - jnp.max(s, axis=-1, keepdims=True)
        e = jnp.exp(s)
        return e * pl.reciprocal(jnp.sum(e, axis=-1, keepdims=True),
                                 approx=approx_recip)

    lt, dm = out_ref.shape[1], out_ref.shape[2]
    acc = jnp.zeros((lt, dm), f32)                # distributed output projection
    series_l, prior_l = [], []

    # Static unroll over heads (H is small).
    # TODO(synk): the q/q1 head split is still a narrow lane slice; a fully
    # head-batched einsum would need a (L,H*Ek)->(H,L,Ek) relayout that costs
    # more than it saves at these head dims.
    for h in range(H):
        qh = q_m[:, h * Ek:(h + 1) * Ek]          # (Lt, Ek)  lane slice
        q1h = q1_m[:, h * Ek:(h + 1) * Ek]
        kh = k_m[h * Ek:(h + 1) * Ek, :]          # (Ek, S)   sublane slice (cheap)
        k1h = k1_m[h * Ek:(h + 1) * Ek, :]
        vh = v_m[h * Ev:(h + 1) * Ev, :]          # (Ev, S)

        # scale already folded into q / q1 weights.
        series_h = softmax(jnp.dot(qh, kh, preferred_element_type=f32))    # (Lt,S)
        prior_h = softmax(jnp.dot(q1h, k1h, preferred_element_type=f32))   # (Lt,S)

        out_h = lax.dot_general(series_h.astype(mxu_dtype), vh, ct_last,
                                preferred_element_type=f32)                # (Lt,Ev)
        acc = acc + jnp.dot(out_h.astype(mxu_dtype),
                            wo[h * Ev:(h + 1) * Ev, :],
                            preferred_element_type=f32)                    # (Lt,Dm)

        series_l.append(series_h)
        prior_l.append(prior_h)

    # One full-block, lane-dense store per attention map (not H partial stores).
    series_ref[0] = jnp.stack(series_l, axis=0).astype(series_ref.dtype)
    prior_ref[0] = jnp.stack(prior_l, axis=0).astype(prior_ref.dtype)
    out_ref[0] = (acc + bo_ref[...]).astype(out_ref.dtype)
    sigma_ref[0] = qs[:, H * Ek:].astype(sigma_ref.dtype)


# ------------------------------ Parameters ----------------------------------

def init_params(key, d_model, n_heads, d_keys=None, d_values=None):
    """fp32 master parameters, matching nn.Linear default init / layouts."""
    d_keys = d_keys or d_model // n_heads
    d_values = d_values or d_model // n_heads

    def lin(k, out_f, in_f):
        k1, k2 = jax.random.split(k)
        bound = 1.0 / sqrt(in_f)
        w = jax.random.uniform(k1, (out_f, in_f), jnp.float32, -bound, bound)
        b = jax.random.uniform(k2, (out_f,), jnp.float32, -bound, bound)
        return w, b

    ks = jax.random.split(key, 7)
    return {
        "query": lin(ks[0], d_keys * n_heads, d_model),
        "key": lin(ks[1], d_keys * n_heads, d_model),
        "value": lin(ks[2], d_values * n_heads, d_model),
        "query1": lin(ks[3], d_keys * n_heads, d_model),
        "key1": lin(ks[4], d_keys * n_heads, d_model),
        "sigma": lin(ks[5], n_heads, d_model),
        "out": lin(ks[6], d_model, d_values * n_heads),
        # LayerNorm params exist in the PyTorch module but are unused in forward().
        "ln_gamma": jnp.ones((d_model,), jnp.float32),
        "ln_beta": jnp.zeros((d_model,), jnp.float32),
    }


def pack_params(params, n_heads, *, mxu_dtype=jnp.bfloat16):
    """One-time transform of PyTorch-layout Linear params into kernel operands.

    Done once, outside the per-call forward, so no weight transposes / concats
    are traced into every forward call (perf feedback). Weight matrices are
    stored in the MXU operand dtype (default bf16); biases stay fp32 (they are
    added to fp32 accumulators). 1/sqrt(d_keys) is folded into W_q / W_q1.
    """
    H = n_heads
    f32 = jnp.float32
    wq, bq = params["query"]
    wk, bk = params["key"]
    wv, bv = params["value"]
    wq1, bq1 = params["query1"]
    wk1, bk1 = params["key1"]
    wsig, bsig = params["sigma"]
    wo, bo = params["out"]

    Ek = wq.shape[0] // H
    scale = 1.0 / sqrt(Ek)
    wq_s, bq_s = jnp.asarray(wq, f32) * scale, jnp.asarray(bq, f32) * scale
    wq1_s, bq1_s = jnp.asarray(wq1, f32) * scale, jnp.asarray(bq1, f32) * scale

    return {
        # query + sigma fused (shared input activation), PyTorch (out, in) layout.
        "wqs": jnp.concatenate([wq_s, jnp.asarray(wsig, f32)], axis=0).astype(mxu_dtype),
        "bqs": jnp.concatenate([bq_s, jnp.asarray(bsig, f32)]).reshape(1, -1),
        # key/key1/value kept in (out, in) layout: used as feature-major W @ X^T.
        "wk": jnp.asarray(wk, f32).astype(mxu_dtype),
        "bk": jnp.asarray(bk, f32).reshape(-1, 1),
        "wv": jnp.asarray(wv, f32).astype(mxu_dtype),
        "bv": jnp.asarray(bv, f32).reshape(-1, 1),
        "wq1": wq1_s.astype(mxu_dtype),
        "bq1": bq1_s.reshape(1, -1),
        "wk1": jnp.asarray(wk1, f32).astype(mxu_dtype),
        "bk1": jnp.asarray(bk1, f32).reshape(-1, 1),
        # out-projection pre-transposed to (H*Ev, Dm) for per-head sublane slices.
        "wo": jnp.asarray(wo, f32).T.astype(mxu_dtype),
        "bo": jnp.asarray(bo, f32).reshape(1, -1),
    }


# ------------------------------- Forward -------------------------------------

def attention_layer_forward(packed, queries, keys, values, queries1, keys1,
                            attn_mask=None, *, n_heads=4, block_l=None,
                            map_dtype=jnp.float32, approx_recip=True):
    """Fused AttentionLayer forward. Returns (out, series, prior, sigma)."""
    # TODO(synk): attn_mask is accepted but not applied (inner_attention is an
    # injected module in the PyTorch spec; unmasked SDPA is implemented here).
    del attn_mask
    B, L, Dm = queries.shape
    S = keys.shape[1]
    H = n_heads
    HEk = packed["wk"].shape[0]
    HEv = packed["wv"].shape[0]
    Ek, Ev = HEk // H, HEv // H
    mxu_dtype = packed["wqs"].dtype
    act_dtype = queries.dtype

    # L-tile: largest 128-multiple that divides L, else the whole L.
    if block_l is None:
        block_l = L
        for cand in (512, 256, 128):
            if L % cand == 0:
                block_l = cand
                break
    assert L % block_l == 0, "block_l must divide L"
    n_lt = L // block_l

    w_args = [packed[k] for k in ("wqs", "bqs", "wk", "bk", "wv", "bv",
                                  "wq1", "bq1", "wk1", "bk1", "wo", "bo")]

    def resident(arr):
        nd = arr.ndim
        return pl.BlockSpec(arr.shape, lambda b, l, nd=nd: (0,) * nd)

    in_specs = [
        pl.BlockSpec((1, block_l, Dm), lambda b, l: (b, l, 0)),   # queries
        pl.BlockSpec((1, S, Dm), lambda b, l: (b, 0, 0)),         # keys
        pl.BlockSpec((1, S, Dm), lambda b, l: (b, 0, 0)),         # values
        pl.BlockSpec((1, block_l, Dm), lambda b, l: (b, l, 0)),   # queries1
        pl.BlockSpec((1, S, Dm), lambda b, l: (b, 0, 0)),         # keys1
    ] + [resident(w) for w in w_args]

    out_specs = (
        pl.BlockSpec((1, block_l, Dm), lambda b, l: (b, l, 0)),       # out
        pl.BlockSpec((1, H, block_l, S), lambda b, l: (b, 0, l, 0)),  # series
        pl.BlockSpec((1, H, block_l, S), lambda b, l: (b, 0, l, 0)),  # prior
        pl.BlockSpec((1, block_l, H), lambda b, l: (b, l, 0)),        # sigma
    )
    out_shape = (
        jax.ShapeDtypeStruct((B, L, Dm), act_dtype),
        jax.ShapeDtypeStruct((B, H, L, S), map_dtype),
        jax.ShapeDtypeStruct((B, H, L, S), map_dtype),
        jax.ShapeDtypeStruct((B, L, H), act_dtype),
    )

    # VMEM budget sized from the actual (double-buffered) block set; clamped to
    # 64 MiB so it stays valid on v7x (v5e/v6e have 128 MiB physical).
    def nb(shape, dtype):
        n = 1
        for d in shape:
            n *= int(d)
        return n * np.dtype(dtype).itemsize

    blocks = [
        ((1, block_l, Dm), queries.dtype),
        ((1, S, Dm), keys.dtype),
        ((1, S, Dm), values.dtype),
        ((1, block_l, Dm), queries1.dtype),
        ((1, S, Dm), keys1.dtype),
        ((1, block_l, Dm), act_dtype),
        ((1, H, block_l, S), map_dtype),
        ((1, H, block_l, S), map_dtype),
        ((1, block_l, H), act_dtype),
    ] + [(w.shape, w.dtype) for w in w_args]
    blk_bytes = 2 * sum(nb(s, d) for s, d in blocks)          # double-buffered
    vmem_limit = int(min(max(2 * blk_bytes, 32 << 20), 64 << 20))

    kern = functools.partial(_attn_layer_kernel, n_heads=H, e_k=Ek, e_v=Ev,
                             mxu_dtype=mxu_dtype, approx_recip=approx_recip)

    out, series, prior, sigma = pl.pallas_call(
        kern,
        out_shape=out_shape,
        grid=(B, n_lt),
        in_specs=in_specs,
        out_specs=out_specs,
        compiler_params=pltpu.CompilerParams(
            dimension_semantics=("parallel", "parallel"),
            vmem_limit_bytes=vmem_limit,
        ),
    )(queries, keys, values, queries1, keys1, *w_args)

    return out, series, prior, sigma


# --------------------------------- Main ---------------------------------------

if __name__ == "__main__":
    B, L, S = 2, 8, 8
    d_model, n_heads = 32, 4

    root = jax.random.PRNGKey(0)
    k_in, k_par = jax.random.split(root)
    kq, kk, kv, kq1, kk1 = jax.random.split(k_in, 5)

    queries = jax.random.normal(kq, (B, L, d_model), jnp.float32)
    keys = jax.random.normal(kk, (B, S, d_model), jnp.float32)
    values = jax.random.normal(kv, (B, S, d_model), jnp.float32)
    queries1 = jax.random.normal(kq1, (B, L, d_model), jnp.float32)
    keys1 = jax.random.normal(kk1, (B, S, d_model), jnp.float32)

    params = init_params(k_par, d_model, n_heads)
    packed = pack_params(params, n_heads)          # one-time weight prep (bf16 MXU operands)

    fwd = jax.jit(functools.partial(attention_layer_forward, n_heads=n_heads))
    out, series, prior, sigma = fwd(packed, queries, keys, values,
                                    queries1, keys1, None)
    jax.block_until_ready((out, series, prior, sigma))

    assert out.shape == (B, L, d_model)
    assert series.shape == (B, n_heads, L, S)
    assert prior.shape == (B, n_heads, L, S)
    assert sigma.shape == (B, L, n_heads)
    assert bool(jnp.all(jnp.isfinite(out)))
    print("KERNEL_OK")
</pallas_src>

<mosaic_0001>
module attributes {stable_mosaic.version = 11 : i64} {
  func.func @_attn_layer_kernel(%arg0: i32, %arg1: i32, %arg2: memref<1x8x32xf32, #tpu.memory_space<vmem>>, %arg3: memref<1x8x32xf32, #tpu.memory_space<vmem>>, %arg4: memref<1x8x32xf32, #tpu.memory_space<vmem>>, %arg5: memref<1x8x32xf32, #tpu.memory_space<vmem>>, %arg6: memref<1x8x32xf32, #tpu.memory_space<vmem>>, %arg7: memref<36x32xbf16, #tpu.memory_space<vmem>>, %arg8: memref<1x36xf32, #tpu.memory_space<vmem>>, %arg9: memref<32x32xbf16, #tpu.memory_space<vmem>>, %arg10: memref<32x1xf32, #tpu.memory_space<vmem>>, %arg11: memref<32x32xbf16, #tpu.memory_space<vmem>>, %arg12: memref<32x1xf32, #tpu.memory_space<vmem>>, %arg13: memref<32x32xbf16, #tpu.memory_space<vmem>>, %arg14: memref<1x32xf32, #tpu.memory_space<vmem>>, %arg15: memref<32x32xbf16, #tpu.memory_space<vmem>>, %arg16: memref<32x1xf32, #tpu.memory_space<vmem>>, %arg17: memref<32x32xbf16, #tpu.memory_space<vmem>>, %arg18: memref<1x32xf32, #tpu.memory_space<vmem>>, %arg19: memref<1x8x32xf32, #tpu.memory_space<vmem>>, %arg20: memref<1x4x8x8xf32, #tpu.memory_space<vmem>>, %arg21: memref<1x4x8x8xf32, #tpu.memory_space<vmem>>, %arg22: memref<1x8x4xf32, #tpu.memory_space<vmem>>) attributes {dimension_semantics = [#tpu.dimension_semantics<parallel>, #tpu.dimension_semantics<parallel>], iteration_bounds = array<i64: 2, 1>, scalar_prefetch = 0 : i64, scratch_operands = 0 : i64, tpu.core_type = #tpu.core_type<tc>, window_params = [{transform_indices = @transform_0, window_bounds = array<i64: 1, 8, 32>}, {transform_indices = @transform_1, window_bounds = array<i64: 1, 8, 32>}, {transform_indices = @transform_2, window_bounds = array<i64: 1, 8, 32>}, {transform_indices = @transform_3, window_bounds = array<i64: 1, 8, 32>}, {transform_indices = @transform_4, window_bounds = array<i64: 1, 8, 32>}, {pipeline_mode = #tpu.pipeline_mode<synchronous>, transform_indices = @transform_5, window_bounds = array<i64: 36, 32>}, {pipeline_mode = #tpu.pipeline_mode<synchronous>, transform_indices = @transform_6, window_bounds = array<i64: 1, 36>}, {pipeline_mode = #tpu.pipeline_mode<synchronous>, transform_indices = @transform_7, window_bounds = array<i64: 32, 32>}, {pipeline_mode = #tpu.pipeline_mode<synchronous>, transform_indices = @transform_8, window_bounds = array<i64: 32, 1>}, {pipeline_mode = #tpu.pipeline_mode<synchronous>, transform_indices = @transform_9, window_bounds = array<i64: 32, 32>}, {pipeline_mode = #tpu.pipeline_mode<synchronous>, transform_indices = @transform_10, window_bounds = array<i64: 32, 1>}, {pipeline_mode = #tpu.pipeline_mode<synchronous>, transform_indices = @transform_11, window_bounds = array<i64: 32, 32>}, {pipeline_mode = #tpu.pipeline_mode<synchronous>, transform_indices = @transform_12, window_bounds = array<i64: 1, 32>}, {pipeline_mode = #tpu.pipeline_mode<synchronous>, transform_indices = @transform_13, window_bounds = array<i64: 32, 32>}, {pipeline_mode = #tpu.pipeline_mode<synchronous>, transform_indices = @transform_14, window_bounds = array<i64: 32, 1>}, {pipeline_mode = #tpu.pipeline_mode<synchronous>, transform_indices = @transform_15, window_bounds = array<i64: 32, 32>}, {pipeline_mode = #tpu.pipeline_mode<synchronous>, transform_indices = @transform_16, window_bounds = array<i64: 1, 32>}, {transform_indices = @transform_17, window_bounds = array<i64: 1, 8, 32>}, {transform_indices = @transform_18, window_bounds = array<i64: 1, 4, 8, 8>}, {transform_indices = @transform_19, window_bounds = array<i64: 1, 4, 8, 8>}, {transform_indices = @transform_20, window_bounds = array<i64: 1, 8, 4>}]} {
    %c0 = arith.constant 0 : index
    %c0_0 = arith.constant 0 : index
    %c0_1 = arith.constant 0 : index
    %0 = vector.load %arg2[%c0, %c0_0, %c0_1] : memref<1x8x32xf32, #tpu.memory_space<vmem>>, vector<1x8x32xf32>
    %1 = vector.shape_cast %0 : vector<1x8x32xf32> to vector<8x32xf32>
    %2 = arith.truncf %1 : vector<8x32xf32> to vector<8x32xbf16>
    %c0_2 = arith.constant 0 : index
    %c0_3 = arith.constant 0 : index
    %c0_4 = arith.constant 0 : index
    %3 = vector.load %arg3[%c0_2, %c0_3, %c0_4] : memref<1x8x32xf32, #tpu.memory_space<vmem>>, vector<1x8x32xf32>
    %4 = vector.shape_cast %3 : vector<1x8x32xf32> to vector<8x32xf32>
    %5 = arith.truncf %4 : vector<8x32xf32> to vector<8x32xbf16>
    %c0_5 = arith.constant 0 : index
    %c0_6 = arith.constant 0 : index
    %c0_7 = arith.constant 0 : index
    %6 = vector.load %arg4[%c0_5, %c0_6, %c0_7] : memref<1x8x32xf32, #tpu.memory_space<vmem>>, vector<1x8x32xf32>
    %7 = vector.shape_cast %6 : vector<1x8x32xf32> to vector<8x32xf32>
    %8 = arith.truncf %7 : vector<8x32xf32> to vector<8x32xbf16>
    %c0_8 = arith.constant 0 : index
    %c0_9 = arith.constant 0 : index
    %c0_10 = arith.constant 0 : index
    %9 = vector.load %arg5[%c0_8, %c0_9, %c0_10] : memref<1x8x32xf32, #tpu.memory_space<vmem>>, vector<1x8x32xf32>
    %10 = vector.shape_cast %9 : vector<1x8x32xf32> to vector<8x32xf32>
    %11 = arith.truncf %10 : vector<8x32xf32> to vector<8x32xbf16>
    %c0_11 = arith.constant 0 : index
    %c0_12 = arith.constant 0 : index
    %c0_13 = arith.constant 0 : index
    %12 = vector.load %arg6[%c0_11, %c0_12, %c0_13] : memref<1x8x32xf32, #tpu.memory_space<vmem>>, vector<1x8x32xf32>
    %13 = vector.shape_cast %12 : vector<1x8x32xf32> to vector<8x32xf32>
    %14 = arith.truncf %13 : vector<8x32xf32> to vector<8x32xbf16>
    %c0_14 = arith.constant 0 : index
    %c0_15 = arith.constant 0 : index
    %15 = vector.load %arg7[%c0_14, %c0_15] : memref<36x32xbf16, #tpu.memory_space<vmem>>, vector<36x32xbf16>
    %cst = arith.constant dense<0.000000e+00> : vector<8x36xf32>
    %16 = tpu.matmul %2, %15, %cst {dimension_numbers = #tpu.dot_dimension_numbers<[1], [1], [0], [0], [0, 0, 1, 0], [], []>} : vector<8x32xbf16>, vector<36x32xbf16>, vector<8x36xf32> -> vector<8x36xf32>
    %c0_16 = arith.constant 0 : index
    %c0_17 = arith.constant 0 : index
    %17 = vector.load %arg8[%c0_16, %c0_17] : memref<1x36xf32, #tpu.memory_space<vmem>>, vector<1x36xf32>
    %18 = vector.broadcast %17 : vector<1x36xf32> to vector<8x36xf32>
    %19 = arith.addf %16, %18 : vector<8x36xf32>
    %c0_18 = arith.constant 0 : index
    %c0_19 = arith.constant 0 : index
    %20 = vector.load %arg13[%c0_18, %c0_19] : memref<32x32xbf16, #tpu.memory_space<vmem>>, vector<32x32xbf16>
    %cst_20 = arith.constant dense<0.000000e+00> : vector<8x32xf32>
    %21 = tpu.matmul %11, %20, %cst_20 {dimension_numbers = #tpu.dot_dimension_numbers<[1], [1], [0], [0], [0, 0, 1, 0], [], []>} : vector<8x32xbf16>, vector<32x32xbf16>, vector<8x32xf32> -> vector<8x32xf32>
    %c0_21 = arith.constant 0 : index
    %c0_22 = arith.constant 0 : index
    %22 = vector.load %arg14[%c0_21, %c0_22] : memref<1x32xf32, #tpu.memory_space<vmem>>, vector<1x32xf32>
    %23 = vector.broadcast %22 : vector<1x32xf32> to vector<8x32xf32>
    %24 = arith.addf %21, %23 : vector<8x32xf32>
    %c0_23 = arith.constant 0 : index
    %c0_24 = arith.constant 0 : index
    %25 = vector.load %arg9[%c0_23, %c0_24] : memref<32x32xbf16, #tpu.memory_space<vmem>>, vector<32x32xbf16>
    %cst_25 = arith.constant dense<0.000000e+00> : vector<32x8xf32>
    %26 = tpu.matmul %25, %5, %cst_25 {dimension_numbers = #tpu.dot_dimension_numbers<[1], [1], [0], [0], [0, 0, 1, 0], [], []>} : vector<32x32xbf16>, vector<8x32xbf16>, vector<32x8xf32> -> vector<32x8xf32>
    %c0_26 = arith.constant 0 : index
    %c0_27 = arith.constant 0 : index
    %27 = vector.load %arg10[%c0_26, %c0_27] : memref<32x1xf32, #tpu.memory_space<vmem>>, vector<32x1xf32>
    %28 = vector.broadcast %27 : vector<32x1xf32> to vector<32x8xf32>
    %29 = arith.addf %26, %28 : vector<32x8xf32>
    %c0_28 = arith.constant 0 : index
    %c0_29 = arith.constant 0 : index
    %30 = vector.load %arg15[%c0_28, %c0_29] : memref<32x32xbf16, #tpu.memory_space<vmem>>, vector<32x32xbf16>
    %cst_30 = arith.constant dense<0.000000e+00> : vector<32x8xf32>
    %31 = tpu.matmul %30, %14, %cst_30 {dimension_numbers = #tpu.dot_dimension_numbers<[1], [1], [0], [0], [0, 0, 1, 0], [], []>} : vector<32x32xbf16>, vector<8x32xbf16>, vector<32x8xf32> -> vector<32x8xf32>
    %c0_31 = arith.constant 0 : index
    %c0_32 = arith.constant 0 : index
    %32 = vector.load %arg16[%c0_31, %c0_32] : memref<32x1xf32, #tpu.memory_space<vmem>>, vector<32x1xf32>
    %33 = vector.broadcast %32 : vector<32x1xf32> to vector<32x8xf32>
    %34 = arith.addf %31, %33 : vector<32x8xf32>
    %c0_33 = arith.constant 0 : index
    %c0_34 = arith.constant 0 : index
    %35 = vector.load %arg11[%c0_33, %c0_34] : memref<32x32xbf16, #tpu.memory_space<vmem>>, vector<32x32xbf16>
    %cst_35 = arith.constant dense<0.000000e+00> : vector<32x8xf32>
    %36 = tpu.matmul %35, %8, %cst_35 {dimension_numbers = #tpu.dot_dimension_numbers<[1], [1], [0], [0], [0, 0, 1, 0], [], []>} : vector<32x32xbf16>, vector<8x32xbf16>, vector<32x8xf32> -> vector<32x8xf32>
    %c0_36 = arith.constant 0 : index
    %c0_37 = arith.constant 0 : index
    %37 = vector.load %arg12[%c0_36, %c0_37] : memref<32x1xf32, #tpu.memory_space<vmem>>, vector<32x1xf32>
    %38 = vector.broadcast %37 : vector<32x1xf32> to vector<32x8xf32>
    %39 = arith.addf %36, %38 : vector<32x8xf32>
    %40 = vector.extract_strided_slice %19 {offsets = [0, 0], sizes = [8, 32], strides = [1, 1]} : vector<8x36xf32> to vector<8x32xf32>
    %41 = arith.truncf %40 : vector<8x32xf32> to vector<8x32xbf16>
    %42 = arith.truncf %24 : vector<8x32xf32> to vector<8x32xbf16>
    %43 = arith.truncf %29 : vector<32x8xf32> to vector<32x8xbf16>
    %44 = arith.truncf %34 : vector<32x8xf32> to vector<32x8xbf16>
    %45 = arith.truncf %39 : vector<32x8xf32> to vector<32x8xbf16>
    %c0_38 = arith.constant 0 : index
    %c0_39 = arith.constant 0 : index
    %46 = vector.load %arg17[%c0_38, %c0_39] : memref<32x32xbf16, #tpu.memory_space<vmem>>, vector<32x32xbf16>
    %cst_40 = arith.constant 0.000000e+00 : f32
    %47 = vector.broadcast %cst_40 : f32 to vector<8x32xf32>
    %48 = vector.extract_strided_slice %41 {offsets = [0, 0], sizes = [8, 8], strides = [1, 1]} : vector<8x32xbf16> to vector<8x8xbf16>
    %49 = vector.extract_strided_slice %42 {offsets = [0, 0], sizes = [8, 8], strides = [1, 1]} : vector<8x32xbf16> to vector<8x8xbf16>
    %50 = vector.extract_strided_slice %43 {offsets = [0, 0], sizes = [8, 8], strides = [1, 1]} : vector<32x8xbf16> to vector<8x8xbf16>
    %51 = vector.extract_strided_slice %44 {offsets = [0, 0], sizes = [8, 8], strides = [1, 1]} : vector<32x8xbf16> to vector<8x8xbf16>
    %52 = vector.extract_strided_slice %45 {offsets = [0, 0], sizes = [8, 8], strides = [1, 1]} : vector<32x8xbf16> to vector<8x8xbf16>
    %cst_41 = arith.constant dense<0.000000e+00> : vector<8x8xf32>
    %53 = tpu.matmul %48, %50, %cst_41 {dimension_numbers = #tpu.dot_dimension_numbers<[1], [0], [0], [1], [0, 0, 1, 1], [], []>} : vector<8x8xbf16>, vector<8x8xbf16>, vector<8x8xf32> -> vector<8x8xf32>
    %cst_42 = arith.constant dense<0xFF800000> : vector<8xf32>
    %54 = vector.multi_reduction <maximumf>, %53, %cst_42 [1] : vector<8x8xf32> to vector<8xf32>
    %55 = vector.shape_cast %54 : vector<8xf32> to vector<8x1xf32>
    %56 = vector.broadcast %55 : vector<8x1xf32> to vector<8x8xf32>
    %57 = arith.subf %53, %56 : vector<8x8xf32>
    %58 = math.exp %57 : vector<8x8xf32>
    %cst_43 = arith.constant dense<0.000000e+00> : vector<8xf32>
    %59 = vector.multi_reduction <add>, %58, %cst_43 [1] : vector<8x8xf32> to vector<8xf32>
    %60 = vector.shape_cast %59 : vector<8xf32> to vector<8x1xf32>
    %61 = tpu.reciprocal %60 {approx = true} : vector<8x1xf32> -> vector<8x1xf32>
    %62 = vector.broadcast %61 : vector<8x1xf32> to vector<8x8xf32>
    %63 = arith.mulf %58, %62 : vector<8x8xf32>
    %cst_44 = arith.constant dense<0.000000e+00> : vector<8x8xf32>
    %64 = tpu.matmul %49, %51, %cst_44 {dimension_numbers = #tpu.dot_dimension_numbers<[1], [0], [0], [1], [0, 0, 1, 1], [], []>} : vector<8x8xbf16>, vector<8x8xbf16>, vector<8x8xf32> -> vector<8x8xf32>
    %cst_45 = arith.constant dense<0xFF800000> : vector<8xf32>
    %65 = vector.multi_reduction <maximumf>, %64, %cst_45 [1] : vector<8x8xf32> to vector<8xf32>
    %66 = vector.shape_cast %65 : vector<8xf32> to vector<8x1xf32>
    %67 = vector.broadcast %66 : vector<8x1xf32> to vector<8x8xf32>
    %68 = arith.subf %64, %67 : vector<8x8xf32>
    %69 = math.exp %68 : vector<8x8xf32>
    %cst_46 = arith.constant dense<0.000000e+00> : vector<8xf32>
    %70 = vector.multi_reduction <add>, %69, %cst_46 [1] : vector<8x8xf32> to vector<8xf32>
    %71 = vector.shape_cast %70 : vector<8xf32> to vector<8x1xf32>
    %72 = tpu.reciprocal %71 {approx = true} : vector<8x1xf32> -> vector<8x1xf32>
    %73 = vector.broadcast %72 : vector<8x1xf32> to vector<8x8xf32>
    %74 = arith.mulf %69, %73 : vector<8x8xf32>
    %75 = arith.truncf %63 : vector<8x8xf32> to vector<8x8xbf16>
    %cst_47 = arith.constant dense<0.000000e+00> : vector<8x8xf32>
    %76 = tpu.matmul %75, %52, %cst_47 {dimension_numbers = #tpu.dot_dimension_numbers<[1], [1], [0], [0], [0, 0, 1, 0], [], []>} : vector<8x8xbf16>, vector<8x8xbf16>, vector<8x8xf32> -> vector<8x8xf32>
    %77 = arith.truncf %76 : vector<8x8xf32> to vector<8x8xbf16>
    %78 = vector.extract_strided_slice %46 {offsets = [0, 0], sizes = [8, 32], strides = [1, 1]} : vector<32x32xbf16> to vector<8x32xbf16>
    %cst_48 = arith.constant dense<0.000000e+00> : vector<8x32xf32>
    %79 = tpu.matmul %77, %78, %cst_48 {dimension_numbers = #tpu.dot_dimension_numbers<[1], [0], [0], [1], [0, 0, 1, 1], [], []>} : vector<8x8xbf16>, vector<8x32xbf16>, vector<8x32xf32> -> vector<8x32xf32>
    %80 = arith.addf %47, %79 : vector<8x32xf32>
    %81 = vector.extract_strided_slice %41 {offsets = [0, 8], sizes = [8, 8], strides = [1, 1]} : vector<8x32xbf16> to vector<8x8xbf16>
    %82 = vector.extract_strided_slice %42 {offsets = [0, 8], sizes = [8, 8], strides = [1, 1]} : vector<8x32xbf16> to vector<8x8xbf16>
    %83 = vector.extract_strided_slice %43 {offsets = [8, 0], sizes = [8, 8], strides = [1, 1]} : vector<32x8xbf16> to vector<8x8xbf16>
    %84 = vector.extract_strided_slice %44 {offsets = [8, 0], sizes = [8, 8], strides = [1, 1]} : vector<32x8xbf16> to vector<8x8xbf16>
    %85 = vector.extract_strided_slice %45 {offsets = [8, 0], sizes = [8, 8], strides = [1, 1]} : vector<32x8xbf16> to vector<8x8xbf16>
    %cst_49 = arith.constant dense<0.000000e+00> : vector<8x8xf32>
    %86 = tpu.matmul %81, %83, %cst_49 {dimension_numbers = #tpu.dot_dimension_numbers<[1], [0], [0], [1], [0, 0, 1, 1], [], []>} : vector<8x8xbf16>, vector<8x8xbf16>, vector<8x8xf32> -> vector<8x8xf32>
    %cst_50 = arith.constant dense<0xFF800000> : vector<8xf32>
    %87 = vector.multi_reduction <maximumf>, %86, %cst_50 [1] : vector<8x8xf32> to vector<8xf32>
    %88 = vector.shape_cast %87 : vector<8xf32> to vector<8x1xf32>
    %89 = vector.broadcast %88 : vector<8x1xf32> to vector<8x8xf32>
    %90 = arith.subf %86, %89 : vector<8x8xf32>
    %91 = math.exp %90 : vector<8x8xf32>
    %cst_51 = arith.constant dense<0.000000e+00> : vector<8xf32>
    %92 = vector.multi_reduction <add>, %91, %cst_51 [1] : vector<8x8xf32> to vector<8xf32>
    %93 = vector.shape_cast %92 : vector<8xf32> to vector<8x1xf32>
    %94 = tpu.reciprocal %93 {approx = true} : vector<8x1xf32> -> vector<8x1xf32>
    %95 = vector.broadcast %94 : vector<8x1xf32> to vector<8x8xf32>
    %96 = arith.mulf %91, %95 : vector<8x8xf32>
    %cst_52 = arith.constant dense<0.000000e+00> : vector<8x8xf32>
    %97 = tpu.matmul %82, %84, %cst_52 {dimension_numbers = #tpu.dot_dimension_numbers<[1], [0], [0], [1], [0, 0, 1, 1], [], []>} : vector<8x8xbf16>, vector<8x8xbf16>, vector<8x8xf32> -> vector<8x8xf32>
    %cst_53 = arith.constant dense<0xFF800000> : vector<8xf32>
    %98 = vector.multi_reduction <maximumf>, %97, %cst_53 [1] : vector<8x8xf32> to vector<8xf32>
    %99 = vector.shape_cast %98 : vector<8xf32> to vector<8x1xf32>
    %100 = vector.broadcast %99 : vector<8x1xf32> to vector<8x8xf32>
    %101 = arith.subf %97, %100 : vector<8x8xf32>
    %102 = math.exp %101 : vector<8x8xf32>
    %cst_54 = arith.constant dense<0.000000e+00> : vector<8xf32>
    %103 = vector.multi_reduction <add>, %102, %cst_54 [1] : vector<8x8xf32> to vector<8xf32>
    %104 = vector.shape_cast %103 : vector<8xf32> to vector<8x1xf32>
    %105 = tpu.reciprocal %104 {approx = true} : vector<8x1xf32> -> vector<8x1xf32>
    %106 = vector.broadcast %105 : vector<8x1xf32> to vector<8x8xf32>
    %107 = arith.mulf %102, %106 : vector<8x8xf32>
    %108 = arith.truncf %96 : vector<8x8xf32> to vector<8x8xbf16>
    %cst_55 = arith.constant dense<0.000000e+00> : vector<8x8xf32>
    %109 = tpu.matmul %108, %85, %cst_55 {dimension_numbers = #tpu.dot_dimension_numbers<[1], [1], [0], [0], [0, 0, 1, 0], [], []>} : vector<8x8xbf16>, vector<8x8xbf16>, vector<8x8xf32> -> vector<8x8xf32>
    %110 = arith.truncf %109 : vector<8x8xf32> to vector<8x8xbf16>
    %111 = vector.extract_strided_slice %46 {offsets = [8, 0], sizes = [8, 32], strides = [1, 1]} : vector<32x32xbf16> to vector<8x32xbf16>
    %cst_56 = arith.constant dense<0.000000e+00> : vector<8x32xf32>
    %112 = tpu.matmul %110, %111, %cst_56 {dimension_numbers = #tpu.dot_dimension_numbers<[1], [0], [0], [1], [0, 0, 1, 1], [], []>} : vector<8x8xbf16>, vector<8x32xbf16>, vector<8x32xf32> -> vector<8x32xf32>
    %113 = arith.addf %80, %112 : vector<8x32xf32>
    %114 = vector.extract_strided_slice %41 {offsets = [0, 16], sizes = [8, 8], strides = [1, 1]} : vector<8x32xbf16> to vector<8x8xbf16>
    %115 = vector.extract_strided_slice %42 {offsets = [0, 16], sizes = [8, 8], strides = [1, 1]} : vector<8x32xbf16> to vector<8x8xbf16>
    %116 = vector.extract_strided_slice %43 {offsets = [16, 0], sizes = [8, 8], strides = [1, 1]} : vector<32x8xbf16> to vector<8x8xbf16>
    %117 = vector.extract_strided_slice %44 {offsets = [16, 0], sizes = [8, 8], strides = [1, 1]} : vector<32x8xbf16> to vector<8x8xbf16>
    %118 = vector.extract_strided_slice %45 {offsets = [16, 0], sizes = [8, 8], strides = [1, 1]} : vector<32x8xbf16> to vector<8x8xbf16>
    %cst_57 = arith.constant dense<0.000000e+00> : vector<8x8xf32>
    %119 = tpu.matmul %114, %116, %cst_57 {dimension_numbers = #tpu.dot_dimension_numbers<[1], [0], [0], [1], [0, 0, 1, 1], [], []>} : vector<8x8xbf16>, vector<8x8xbf16>, vector<8x8xf32> -> vector<8x8xf32>
    %cst_58 = arith.constant dense<0xFF800000> : vector<8xf32>
    %120 = vector.multi_reduction <maximumf>, %119, %cst_58 [1] : vector<8x8xf32> to vector<8xf32>
    %121 = vector.shape_cast %120 : vector<8xf32> to vector<8x1xf32>
    %122 = vector.broadcast %121 : vector<8x1xf32> to vector<8x8xf32>
    %123 = arith.subf %119, %122 : vector<8x8xf32>
    %124 = math.exp %123 : vector<8x8xf32>
    %cst_59 = arith.constant dense<0.000000e+00> : vector<8xf32>
    %125 = vector.multi_reduction <add>, %124, %cst_59 [1] : vector<8x8xf32> to vector<8xf32>
    %126 = vector.shape_cast %125 : vector<8xf32> to vector<8x1xf32>
    %127 = tpu.reciprocal %126 {approx = true} : vector<8x1xf32> -> vector<8x1xf32>
    %128 = vector.broadcast %127 : vector<8x1xf32> to vector<8x8xf32>
    %129 = arith.mulf %124, %128 : vector<8x8xf32>
    %cst_60 = arith.constant dense<0.000000e+00> : vector<8x8xf32>
    %130 = tpu.matmul %115, %117, %cst_60 {dimension_numbers = #tpu.dot_dimension_numbers<[1], [0], [0], [1], [0, 0, 1, 1], [], []>} : vector<8x8xbf16>, vector<8x8xbf16>, vector<8x8xf32> -> vector<8x8xf32>
    %cst_61 = arith.constant dense<0xFF800000> : vector<8xf32>
    %131 = vector.multi_reduction <maximumf>, %130, %cst_61 [1] : vector<8x8xf32> to vector<8xf32>
    %132 = vector.shape_cast %131 : vector<8xf32> to vector<8x1xf32>
    %133 = vector.broadcast %132 : vector<8x1xf32> to vector<8x8xf32>
    %134 = arith.subf %130, %133 : vector<8x8xf32>
    %135 = math.exp %134 : vector<8x8xf32>
    %cst_62 = arith.constant dense<0.000000e+00> : vector<8xf32>
    %136 = vector.multi_reduction <add>, %135, %cst_62 [1] : vector<8x8xf32> to vector<8xf32>
    %137 = vector.shape_cast %136 : vector<8xf32> to vector<8x1xf32>
    %138 = tpu.reciprocal %137 {approx = true} : vector<8x1xf32> -> vector<8x1xf32>
    %139 = vector.broadcast %138 : vector<8x1xf32> to vector<8x8xf32>
    %140 = arith.mulf %135, %139 : vector<8x8xf32>
    %141 = arith.truncf %129 : vector<8x8xf32> to vector<8x8xbf16>
    %cst_63 = arith.constant dense<0.000000e+00> : vector<8x8xf32>
    %142 = tpu.matmul %141, %118, %cst_63 {dimension_numbers = #tpu.dot_dimension_numbers<[1], [1], [0], [0], [0, 0, 1, 0], [], []>} : vector<8x8xbf16>, vector<8x8xbf16>, vector<8x8xf32> -> vector<8x8xf32>
    %143 = arith.truncf %142 : vector<8x8xf32> to vector<8x8xbf16>
    %144 = vector.extract_strided_slice %46 {offsets = [16, 0], sizes = [8, 32], strides = [1, 1]} : vector<32x32xbf16> to vector<8x32xbf16>
    %cst_64 = arith.constant dense<0.000000e+00> : vector<8x32xf32>
    %145 = tpu.matmul %143, %144, %cst_64 {dimension_numbers = #tpu.dot_dimension_numbers<[1], [0], [0], [1], [0, 0, 1, 1], [], []>} : vector<8x8xbf16>, vector<8x32xbf16>, vector<8x32xf32> -> vector<8x32xf32>
    %146 = arith.addf %113, %145 : vector<8x32xf32>
    %147 = vector.extract_strided_slice %41 {offsets = [0, 24], sizes = [8, 8], strides = [1, 1]} : vector<8x32xbf16> to vector<8x8xbf16>
    %148 = vector.extract_strided_slice %42 {offsets = [0, 24], sizes = [8, 8], strides = [1, 1]} : vector<8x32xbf16> to vector<8x8xbf16>
    %149 = vector.extract_strided_slice %43 {offsets = [24, 0], sizes = [8, 8], strides = [1, 1]} : vector<32x8xbf16> to vector<8x8xbf16>
    %150 = vector.extract_strided_slice %44 {offsets = [24, 0], sizes = [8, 8], strides = [1, 1]} : vector<32x8xbf16> to vector<8x8xbf16>
    %151 = vector.extract_strided_slice %45 {offsets = [24, 0], sizes = [8, 8], strides = [1, 1]} : vector<32x8xbf16> to vector<8x8xbf16>
    %cst_65 = arith.constant dense<0.000000e+00> : vector<8x8xf32>
    %152 = tpu.matmul %147, %149, %cst_65 {dimension_numbers = #tpu.dot_dimension_numbers<[1], [0], [0], [1], [0, 0, 1, 1], [], []>} : vector<8x8xbf16>, vector<8x8xbf16>, vector<8x8xf32> -> vector<8x8xf32>
    %cst_66 = arith.constant dense<0xFF800000> : vector<8xf32>
    %153 = vector.multi_reduction <maximumf>, %152, %cst_66 [1] : vector<8x8xf32> to vector<8xf32>
    %154 = vector.shape_cast %153 : vector<8xf32> to vector<8x1xf32>
    %155 = vector.broadcast %154 : vector<8x1xf32> to vector<8x8xf32>
    %156 = arith.subf %152, %155 : vector<8x8xf32>
    %157 = math.exp %156 : vector<8x8xf32>
    %cst_67 = arith.constant dense<0.000000e+00> : vector<8xf32>
    %158 = vector.multi_reduction <add>, %157, %cst_67 [1] : vector<8x8xf32> to vector<8xf32>
    %159 = vector.shape_cast %158 : vector<8xf32> to vector<8x1xf32>
    %160 = tpu.reciprocal %159 {approx = true} : vector<8x1xf32> -> vector<8x1xf32>
    %161 = vector.broadcast %160 : vector<8x1xf32> to vector<8x8xf32>
    %162 = arith.mulf %157, %161 : vector<8x8xf32>
    %cst_68 = arith.constant dense<0.000000e+00> : vector<8x8xf32>
    %163 = tpu.matmul %148, %150, %cst_68 {dimension_numbers = #tpu.dot_dimension_numbers<[1], [0], [0], [1], [0, 0, 1, 1], [], []>} : vector<8x8xbf16>, vector<8x8xbf16>, vector<8x8xf32> -> vector<8x8xf32>
    %cst_69 = arith.constant dense<0xFF800000> : vector<8xf32>
    %164 = vector.multi_reduction <maximumf>, %163, %cst_69 [1] : vector<8x8xf32> to vector<8xf32>
    %165 = vector.shape_cast %164 : vector<8xf32> to vector<8x1xf32>
    %166 = vector.broadcast %165 : vector<8x1xf32> to vector<8x8xf32>
    %167 = arith.subf %163, %166 : vector<8x8xf32>
    %168 = math.exp %167 : vector<8x8xf32>
    %cst_70 = arith.constant dense<0.000000e+00> : vector<8xf32>
    %169 = vector.multi_reduction <add>, %168, %cst_70 [1] : vector<8x8xf32> to vector<8xf32>
    %170 = vector.shape_cast %169 : vector<8xf32> to vector<8x1xf32>
    %171 = tpu.reciprocal %170 {approx = true} : vector<8x1xf32> -> vector<8x1xf32>
    %172 = vector.broadcast %171 : vector<8x1xf32> to vector<8x8xf32>
    %173 = arith.mulf %168, %172 : vector<8x8xf32>
    %174 = arith.truncf %162 : vector<8x8xf32> to vector<8x8xbf16>
    %cst_71 = arith.constant dense<0.000000e+00> : vector<8x8xf32>
    %175 = tpu.matmul %174, %151, %cst_71 {dimension_numbers = #tpu.dot_dimension_numbers<[1], [1], [0], [0], [0, 0, 1, 0], [], []>} : vector<8x8xbf16>, vector<8x8xbf16>, vector<8x8xf32> -> vector<8x8xf32>
    %176 = arith.truncf %175 : vector<8x8xf32> to vector<8x8xbf16>
    %177 = vector.extract_strided_slice %46 {offsets = [24, 0], sizes = [8, 32], strides = [1, 1]} : vector<32x32xbf16> to vector<8x32xbf16>
    %cst_72 = arith.constant dense<0.000000e+00> : vector<8x32xf32>
    %178 = tpu.matmul %176, %177, %cst_72 {dimension_numbers = #tpu.dot_dimension_numbers<[1], [0], [0], [1], [0, 0, 1, 1], [], []>} : vector<8x8xbf16>, vector<8x32xbf16>, vector<8x32xf32> -> vector<8x32xf32>
    %179 = arith.addf %146, %178 : vector<8x32xf32>
    %180 = vector.shape_cast %63 : vector<8x8xf32> to vector<1x8x8xf32>
    %181 = vector.shape_cast %96 : vector<8x8xf32> to vector<1x8x8xf32>
    %182 = vector.shape_cast %129 : vector<8x8xf32> to vector<1x8x8xf32>
    %183 = vector.shape_cast %162 : vector<8x8xf32> to vector<1x8x8xf32>
    %184 = tpu.concatenate %180, %181, %182, %183 in 0 : vector<1x8x8xf32>, vector<1x8x8xf32>, vector<1x8x8xf32>, vector<1x8x8xf32> -> vector<4x8x8xf32>
    %c0_73 = arith.constant 0 : index
    %c0_74 = arith.constant 0 : index
    %c0_75 = arith.constant 0 : index
    %c0_76 = arith.constant 0 : index
    %185 = vector.load %arg20[%c0_73, %c0_74, %c0_75, %c0_76] : memref<1x4x8x8xf32, #tpu.memory_space<vmem>>, vector<1x4x8x8xf32>
    %186 = vector.shape_cast %185 : vector<1x4x8x8xf32> to vector<4x8x8xf32>
    %187 = vector.shape_cast %184 : vector<4x8x8xf32> to vector<1x4x8x8xf32>
    tpu.vector_store %arg20[%c0_73, %c0_74, %c0_75, %c0_76], %187 {strides = array<i32>} : memref<1x4x8x8xf32, #tpu.memory_space<vmem>>, vector<1x4x8x8xf32>,
    %188 = vector.shape_cast %74 : vector<8x8xf32> to vector<1x8x8xf32>
    %189 = vector.shape_cast %107 : vector<8x8xf32> to vector<1x8x8xf32>
    %190 = vector.shape_cast %140 : vector<8x8xf32> to vector<1x8x8xf32>
    %191 = vector.shape_cast %173 : vector<8x8xf32> to vector<1x8x8xf32>
    %192 = tpu.concatenate %188, %189, %190, %191 in 0 : vector<1x8x8xf32>, vector<1x8x8xf32>, vector<1x8x8xf32>, vector<1x8x8xf32> -> vector<4x8x8xf32>
    %c0_77 = arith.constant 0 : index
    %c0_78 = arith.constant 0 : index
    %c0_79 = arith.constant 0 : index
    %c0_80 = arith.constant 0 : index
    %193 = vector.load %arg21[%c0_77, %c0_78, %c0_79, %c0_80] : memref<1x4x8x8xf32, #tpu.memory_space<vmem>>, vector<1x4x8x8xf32>
    %194 = vector.shape_cast %193 : vector<1x4x8x8xf32> to vector<4x8x8xf32>
    %195 = vector.shape_cast %192 : vector<4x8x8xf32> to vector<1x4x8x8xf32>
    tpu.vector_store %arg21[%c0_77, %c0_78, %c0_79, %c0_80], %195 {strides = array<i32>} : memref<1x4x8x8xf32, #tpu.memory_space<vmem>>, vector<1x4x8x8xf32>,
    %c0_81 = arith.constant 0 : index
    %c0_82 = arith.constant 0 : index
    %196 = vector.load %arg18[%c0_81, %c0_82] : memref<1x32xf32, #tpu.memory_space<vmem>>, vector<1x32xf32>
    %197 = vector.broadcast %196 : vector<1x32xf32> to vector<8x32xf32>
    %198 = arith.addf %179, %197 : vector<8x32xf32>
    %c0_83 = arith.constant 0 : index
    %c0_84 = arith.constant 0 : index
    %c0_85 = arith.constant 0 : index
    %199 = vector.load %arg19[%c0_83, %c0_84, %c0_85] : memref<1x8x32xf32, #tpu.memory_space<vmem>>, vector<1x8x32xf32>
    %200 = vector.shape_cast %199 : vector<1x8x32xf32> to vector<8x32xf32>
    %201 = vector.shape_cast %198 : vector<8x32xf32> to vector<1x8x32xf32>
    tpu.vector_store %arg19[%c0_83, %c0_84, %c0_85], %201 {strides = array<i32>} : memref<1x8x32xf32, #tpu.memory_space<vmem>>, vector<1x8x32xf32>,
    %202 = vector.extract_strided_slice %19 {offsets = [0, 32], sizes = [8, 4], strides = [1, 1]} : vector<8x36xf32> to vector<8x4xf32>
    %c0_86 = arith.constant 0 : index
    %c0_87 = arith.constant 0 : index
    %c0_88 = arith.constant 0 : index
    %203 = vector.load %arg22[%c0_86, %c0_87, %c0_88] : memref<1x8x4xf32, #tpu.memory_space<vmem>>, vector<1x8x4xf32>
    %204 = vector.shape_cast %203 : vector<1x8x4xf32> to vector<8x4xf32>
    %205 = vector.shape_cast %202 : vector<8x4xf32> to vector<1x8x4xf32>
    tpu.vector_store %arg22[%c0_86, %c0_87, %c0_88], %205 {strides = array<i32>} : memref<1x8x4xf32, #tpu.memory_space<vmem>>, vector<1x8x4xf32>,
    return
  }
  func.func @transform_0(%arg0: i32, %arg1: i32) -> (i32, i32, i32) {
    %c0_i32 = arith.constant 0 : i32
    %c0_i32_0 = arith.constant 0 : i32
    return %arg0, %arg1, %c0_i32 : i32, i32, i32
  }
  func.func @transform_1(%arg0: i32, %arg1: i32) -> (i32, i32, i32) {
    %c0_i32 = arith.constant 0 : i32
    %c0_i32_0 = arith.constant 0 : i32
    %c0_i32_1 = arith.constant 0 : i32
    return %arg0, %c0_i32, %c0_i32_0 : i32, i32, i32
  }
  func.func @transform_2(%arg0: i32, %arg1: i32) -> (i32, i32, i32) {
    %c0_i32 = arith.constant 0 : i32
    %c0_i32_0 = arith.constant 0 : i32
    %c0_i32_1 = arith.constant 0 : i32
    return %arg0, %c0_i32, %c0_i32_0 : i32, i32, i32
  }
  func.func @transform_3(%arg0: i32, %arg1: i32) -> (i32, i32, i32) {
    %c0_i32 = arith.constant 0 : i32
    %c0_i32_0 = arith.constant 0 : i32
    return %arg0, %arg1, %c0_i32 : i32, i32, i32
  }
  func.func @transform_4(%arg0: i32, %arg1: i32) -> (i32, i32, i32) {
    %c0_i32 = arith.constant 0 : i32
    %c0_i32_0 = arith.constant 0 : i32
    %c0_i32_1 = arith.constant 0 : i32
    return %arg0, %c0_i32, %c0_i32_0 : i32, i32, i32
  }
  func.func @transform_5(%arg0: i32, %arg1: i32) -> (i32, i32) {
    %c0_i32 = arith.constant 0 : i32
    %c0_i32_0 = arith.constant 0 : i32
    %c0_i32_1 = arith.constant 0 : i32
    return %c0_i32, %c0_i32_0 : i32, i32
  }
  func.func @transform_6(%arg0: i32, %arg1: i32) -> (i32, i32) {
    %c0_i32 = arith.constant 0 : i32
    %c0_i32_0 = arith.constant 0 : i32
    %c0_i32_1 = arith.constant 0 : i32
    return %c0_i32, %c0_i32_0 : i32, i32
  }
  func.func @transform_7(%arg0: i32, %arg1: i32) -> (i32, i32) {
    %c0_i32 = arith.constant 0 : i32
    %c0_i32_0 = arith.constant 0 : i32
    %c0_i32_1 = arith.constant 0 : i32
    return %c0_i32, %c0_i32_0 : i32, i32
  }
  func.func @transform_8(%arg0: i32, %arg1: i32) -> (i32, i32) {
    %c0_i32 = arith.constant 0 : i32
    %c0_i32_0 = arith.constant 0 : i32
    %c0_i32_1 = arith.constant 0 : i32
    return %c0_i32, %c0_i32_0 : i32, i32
  }
  func.func @transform_9(%arg0: i32, %arg1: i32) -> (i32, i32) {
    %c0_i32 = arith.constant 0 : i32
    %c0_i32_0 = arith.constant 0 : i32
    %c0_i32_1 = arith.constant 0 : i32
    return %c0_i32, %c0_i32_0 : i32, i32
  }
  func.func @transform_10(%arg0: i32, %arg1: i32) -> (i32, i32) {
    %c0_i32 = arith.constant 0 : i32
    %c0_i32_0 = arith.constant 0 : i32
    %c0_i32_1 = arith.constant 0 : i32
    return %c0_i32, %c0_i32_0 : i32, i32
  }
  func.func @transform_11(%arg0: i32, %arg1: i32) -> (i32, i32) {
    %c0_i32 = arith.constant 0 : i32
    %c0_i32_0 = arith.constant 0 : i32
    %c0_i32_1 = arith.constant 0 : i32
    return %c0_i32, %c0_i32_0 : i32, i32
  }
  func.func @transform_12(%arg0: i32, %arg1: i32) -> (i32, i32) {
    %c0_i32 = arith.constant 0 : i32
    %c0_i32_0 = arith.constant 0 : i32
    %c0_i32_1 = arith.constant 0 : i32
    return %c0_i32, %c0_i32_0 : i32, i32
  }
  func.func @transform_13(%arg0: i32, %arg1: i32) -> (i32, i32) {
    %c0_i32 = arith.constant 0 : i32
    %c0_i32_0 = arith.constant 0 : i32
    %c0_i32_1 = arith.constant 0 : i32
    return %c0_i32, %c0_i32_0 : i32, i32
  }
  func.func @transform_14(%arg0: i32, %arg1: i32) -> (i32, i32) {
    %c0_i32 = arith.constant 0 : i32
    %c0_i32_0 = arith.constant 0 : i32
    %c0_i32_1 = arith.constant 0 : i32
    return %c0_i32, %c0_i32_0 : i32, i32
  }
  func.func @transform_15(%arg0: i32, %arg1: i32) -> (i32, i32) {
    %c0_i32 = arith.constant 0 : i32
    %c0_i32_0 = arith.constant 0 : i32
    %c0_i32_1 = arith.constant 0 : i32
    return %c0_i32, %c0_i32_0 : i32, i32
  }
  func.func @transform_16(%arg0: i32, %arg1: i32) -> (i32, i32) {
    %c0_i32 = arith.constant 0 : i32
    %c0_i32_0 = arith.constant 0 : i32
    %c0_i32_1 = arith.constant 0 : i32
    return %c0_i32, %c0_i32_0 : i32, i32
  }
  func.func @transform_17(%arg0: i32, %arg1: i32) -> (i32, i32, i32) {
    %c0_i32 = arith.constant 0 : i32
    %c0_i32_0 = arith.constant 0 : i32
    return %arg0, %arg1, %c0_i32 : i32, i32, i32
  }
  func.func @transform_18(%arg0: i32, %arg1: i32) -> (i32, i32, i32, i32) {
    %c0_i32 = arith.constant 0 : i32
    %c0_i32_0 = arith.constant 0 : i32
    %c0_i32_1 = arith.constant 0 : i32
    return %arg0, %c0_i32, %arg1, %c0_i32_0 : i32, i32, i32, i32
  }
  func.func @transform_19(%arg0: i32, %arg1: i32) -> (i32, i32, i32, i32) {
    %c0_i32 = arith.constant 0 : i32
    %c0_i32_0 = arith.constant 0 : i32
    %c0_i32_1 = arith.constant 0 : i32
    return %arg0, %c0_i32, %arg1, %c0_i32_0 : i32, i32, i32, i32
  }
  func.func @transform_20(%arg0: i32, %arg1: i32) -> (i32, i32, i32) {
    %c0_i32 = arith.constant 0 : i32
    %c0_i32_0 = arith.constant 0 : i32
    return %arg0, %arg1, %c0_i32 : i32, i32, i32
  }
}

</mosaic_0001>

<bundles_post_ra>
// kernel: attention_layer_forward.1
= control target key start
LH: loop header
LB: loop body
LE: loop exit
PB: predicated region body
PF: predicated region fallthrough
CT: control target
= control target key end

     0   :  { %s2845_s0 = inlined_call_operand.vmem [shape: f32[2,8,32], index: 0, kind: input, shape index: {}]   ;;  %s2846_s1 = inlined_call_operand.vmem [shape: f32[2,8,32], index: 1, kind: input, shape index: {}]   ;;  %s2847_s2 = inlined_call_operand.vmem [shape: f32[2,8,32], index: 2, kind: input, shape index: {}]   ;;  %s2848_s3 = inlined_call_operand.vmem [shape: f32[2,8,32], index: 3, kind: input, shape index: {}]   ;;  %s2849_s4 = inlined_call_operand.vmem [shape: f32[2,8,32], index: 4, kind: input, shape index: {}]   ;;  %s2850_s5 = inlined_call_operand.vmem [shape: bf16[36,32], index: 5, kind: input, shape index: {}]   ;;  %s2851_s6 = inlined_call_operand.vmem [shape: f32[1,36], index: 6, kind: input, shape index: {}]   ;;  %s2852_s7 = inlined_call_operand.vmem [shape: bf16[32,32], index: 7, kind: input, shape index: {}]   ;;  %s2853_s8 = inlined_call_operand.vmem [shape: f32[32,1], index: 8, kind: input, shape index: {}]   ;;  %s2854_s9 = inlined_call_operand.vmem [shape: bf16[32,32], index: 9, kind: input, shape index: {}]   ;;  %s2855_s10 = inlined_call_operand.vmem [shape: f32[32,1], index: 10, kind: input, shape index: {}]   ;;  %s2856_s11 = inlined_call_operand.vmem [shape: bf16[32,32], index: 11, kind: input, shape index: {}]   ;;  %s2857_s12 = inlined_call_operand.vmem [shape: f32[1,32], index: 12, kind: input, shape index: {}]   ;;  %s2858_s13 = inlined_call_operand.hbm [shape: bf16[32,32], index: 13, kind: input, shape index: {}]   ;;  %s2859_s14 = inlined_call_operand.vmem [shape: f32[32,1], index: 14, kind: input, shape index: {}]   ;;  %s2860_s15 = inlined_call_operand.hbm [shape: bf16[32,32], index: 15, kind: input, shape index: {}]   ;;  %s2861_s16 = inlined_call_operand.vmem [shape: f32[1,32], index: 16, kind: input, shape index: {}]   ;;  %s2862_s17 = inlined_call_operand.hbm [shape: f32[2,8,32], index: 17, kind: output, shape index: {0}]   ;;  %s2863_s18 = inlined_call_operand.hbm [shape: f32[2,4,8,8], index: 18, kind: output, shape index: {1}]   ;;  %s2864_s19 = inlined_call_operand.hbm [shape: f32[2,4,8,8], index: 19, kind: output, shape index: {2}]   ;;  %s2865_s20 = inlined_call_operand.vmem [shape: f32[2,8,4], index: 20, kind: output, shape index: {3}]  }
   0x1   :  { %2878 = sst [smem:[#allocation22_spill]] %s2845_s0 }
   0x2   :  { %2879 = sst [smem:[#allocation23_spill]] %s2846_s1 }
   0x3   :  { %2880 = sst [smem:[#allocation24_spill]] %s2847_s2 }
   0x4   :  { %2881 = sst [smem:[#allocation25_spill]] %s2848_s3 }
   0x5   :  { %2882 = sst [smem:[#allocation26_spill]] %s2849_s4 }
   0x6   :  { %2883 = sst [smem:[#allocation27_spill]] %s2850_s5 }
   0x7   :  { %2884 = sst [smem:[#allocation28_spill]] %s2851_s6 }
   0x8   :  { %2885 = sst [smem:[#allocation29_spill]] %s2861_s16 }
   0x9   :  { %2886 = sst [smem:[#allocation30_spill]] %s2864_s19 }
   0xa   :  { %26 = vsyncpa [#allocation3], 0 }
   0xb   :  { %27 = vsyncpa [#allocation6], 0 }
   0xc   :  { %28 = vsyncpa [#allocation4], 0 }
   0xd   :  { %30 = vsyncpa [#allocation4 + $0x1], 0 }
   0xe   :  { %31 = vsyncpa [#allocation9], 0 }
   0xf   :  { %33 = vsyncpa [#allocation9 + $0x1], 0  ;;  %s2436_s1 = smov 0   ;;  %s2438_s22 = smov 0  }
  0x10   :  { %s2440_s23 = smov 0   ;;  %s2442_s24 = smov 0  }
  0x11   :  { %s2444_s2 = smov 0   ;;  %s2446_s25 = smov 0  }
  0x12 LB: > { %2887 = sst [smem:[#allocation15_spill]] %s2298_s1  ;;  %s2467_s3 = sadd.s32 4294967295, %s2318_s25   ;;  %s2318_s25 = sphi %s2446_s25, %s39_s25   ;;  %s2314_s2 = sphi %s2444_s2, %s2919_s2   ;;  %s2310_s24 = sphi %s2442_s24, %s2915_s24   ;;  %s2306_s23 = sphi %s2440_s23, %s2914_s23   ;;  %s2302_s22 = sphi %s2438_s22, %s2918_s22   ;;  %s2298_s1 = sphi %s2436_s1, %s2917_s1  }
  0x13   : > { %2888 = sst [smem:[#allocation16_spill]] %s2306_s23  ;;  %s2868_s26 = sadd.s32 4294967294, %s2318_s25  }
  0x14   : > { %2889 = sst [smem:[#allocation17_spill]] %s2314_s2  ;;  %s51_s27 = sadd.s32 1, %s2314_s2 }
  0x15   : > { %2890 = sst [smem:[#allocation18_spill]] %s2318_s25  ;;  %s446_s28 = sadd.s32 1, %s2306_s23 }
  0x16   : > { %p53_p0 = scmp.ge.s32.totalorder %s51_s27, 2  ;;  %p456_p1 = scmp.ne.s32.totalorder %s2306_s23, %s2302_s22 }
  0x17   : > { %p457_p2 = scmp.eq.s32.totalorder %s2467_s3, 1  ;;  %p462_p3 = scmp.ne.s32.totalorder %s2302_s22, %s2298_s1 }
  0x18   : > { %s2921_s27 = smov (%p53_p0, %s51_s27), 0  ;;  %p463_p5 = scmp.eq.s32.totalorder %s2868_s26, 1 }
  0x19   : > { %2891 = sst [smem:[#allocation19_spill]] %s2921_s27  ;;  %p2479_p4 = por %p457_p2, %p456_p1 }
  0x1a   : > { %s441_s29 = ssub.s32 %s2314_s2, %s2921_s27  ;;  %p1877_p6 = scmp.ge.s32.totalorder %s2318_s25, 1 }
  0x1b   : > { %p444_p7 = scmp.eq.s32.totalorder %s441_s29, 0  ;;  %p2488_p8 = por %p463_p5, %p462_p3 }
  0x1c   : > { %p554_p9 = scmp.lt.s32.totalorder %s2318_s25, 3  ;;  %p2010_p11 = scmp.eq.s32.totalorder %s2467_s3, 0 }
  0x1d   : > { %s2893_s30 = scalar_select %p2488_p8, 1, 0 }
  0x1e   : > { %s2494_s0 = scalar_select %p444_p7, %s2306_s23, %s446_s28  }
  0x1f   : > { %2894 = sst [smem:[#allocation20_spill]] %s2893_s30  ;;  %p2496_p10 = pnand %p1877_p6, %p554_p9 }
  0x20   : > { %2895 = sst [smem:[#allocation21_spill]] %s2494_s0  ;;  %s589_s26 = sshll.u32 %s2858_s13, 4  ;;  %s590_s26 = int_to_ptr.hbm [resolvable:$true] %s589_s26 }
  0x21   : > { %p1993_p12 = pneg %p2496_p10  ;;  %s2320_s29 = smov [#allocation2]  }
  0x22   : > { %s591_s27 = sshll.u32 %s2320_s29, 4  ;;  %s606_s0 = sshll.u32 %s2860_s15, 4  ;;  %s592_s27 = int_to_ptr.vmem [resolvable:$true] %s591_s27  ;;  %s607_s0 = int_to_ptr.hbm [resolvable:$true] %s606_s0 }
  0x23   : > { %p1994_p13 = pnand %p2010_p11, %p1993_p12  ;;  %s2321_s23 = smov 64  }
  0x24   : > { %s2322_s30 = smov 4   ;;  %s2323_s25 = smov [#allocation5]  }
  0x25   : > { %1996 = dma.hbm_to_vmem [thread:$0]  (!%p1994_p13), %s590_s26, 256, %s592_s27, [#allocation3], %s2321_s23, %s2321_s23, %s2322_s30  }
  0x26   : > { %s608_s16 = sshll.u32 %s2323_s25, 4  ;;  %668 = sbr.rel (%p2496_p10) target bundleno = 1205 (0x4b5), region = 88  ;;  %s609_s16 = int_to_ptr.vmem [resolvable:$true] %s608_s16 }
  0x27   : > { %1999 = dma.hbm_to_vmem [thread:$0]  (!%p1994_p13), %s607_s0, 256, %s609_s16, [#allocation6], %s2321_s23, %s2321_s23, %s2322_s30  }
  0x2b   : > { %2281 = dma.done.wait (%p2010_p11), [#allocation3], 256  }
  0x2c   : > { %2283 = vsyncadd (%p2010_p11), [#allocation3], 4294967040 }
  0x2d   : > { %2285 = dma.done.wait (%p2010_p11), [#allocation6], 256  }
  0x2e   : > { %2287 = vsyncadd (%p2010_p11), [#allocation6], 4294967040  ;;  %p770_p0 = scmp.lt.s32.totalorder %s2310_s24, 1  ;;  %s2897_s2 = sld [smem:[#allocation23_spill]]  ;;  %v2324_v0 = vmov 0   ;;  %vm836_vm0 = vcmask 261120  }
  0x2f   : > { %2074 = vset.pattern.permute.xlu0 %v2324_v0  ;;  %2075 = vset.pattern.permute.xlu1 %v2324_v0  ;;  %s2898_s5 = sld [smem:[#allocation27_spill]]  ;;  %v906_v5 = vld [vmem:[%s2853_s8] sm:$0xff]  ;;  %v1970_v6 = vld [vmem:[%s2856_s11 + $0x8] sm:$0xff]  ;;  %v908_v24 = vld [vmem:[%s2853_s8 + $0x10] sm:$0xff]  ;;  %vm1122_vm1 = vcmask 1043456   ;;  %vm1118_vm2 = vcmask 64512  }
  0x30   : > { %s771_s19 = scalar_select %p770_p0, %s2310_s24, 1  ;;  %2076 = vset.pattern.permute.xlu2 %v2324_v0  ;;  %912 = vperm.xlu0 %2074, %v906_v5   ;;  %v887_v9 = vsel %vm836_vm0, %v1970_v6, 0  ;;  %v1969_v13 = vld [vmem:[%s2856_s11] sm:$0xff]  ;;  %v907_v17 = vld [vmem:[%s2853_s8 + $0x8] sm:$0xff]  ;;  %v909_v28 = vld [vmem:[%s2853_s8 + $0x18] sm:$0xff]  ;;  %vm1558_vm3 = vcmask 31744  }
  0x31   : > { %s2899_s21 = sld [smem:[#allocation26_spill]]  ;;  %895 = vmatpush.bf16.xpose.msra.mxu1 %v887_v9  ;;  %v1971_v15 = vld [vmem:[%s2852_s7] sm:$0xff]  ;;  %v884_v18 = vsel %vm836_vm0, %v1969_v13, 0  ;;  %v1972_v27 = vld [vmem:[%s2852_s7 + $0x8] sm:$0xff]  ;;  %s2327_s30 = smov 104  }
  0x32   : > { %s2523_s16 = sshll.u32 %s771_s19, 3  ;;  %s2900_s1 = sld [smem:[#allocation25_spill]]  ;;  %v1973_v20 = vld [vmem:[#allocation2] sm:$0xff]  ;;  %v973_v42 = vld [vmem:[%s2859_s14 + $0x8] sm:$0xff] }
  0x33   : > { %s2902_s26 = sld [smem:[#allocation24_spill]]  ;;  %v1975_v38 = vld [vmem:[%s2854_s9] sm:$0xff]  ;;  %983 = vperm.xlu2 %2076, %v973_v42   ;;  %s2328_s0 = smov 96  }
  0x34   : > { %s780_s25 = scalar_lea.vmem %s2897_s2, %s2523_s16  ;;  %s2903_s6 = sld [smem:[#allocation28_spill]]  ;;  %v2078_v47 = vld [vmem:[%s2857_s12] ss:$0 sm:$0xff] }
  0x35   : > { %v818_v1 = vld [vmem:[%s2898_s5 + $0x10] sm:$0x3]  ;;  %v806_v2 = vld [vmem:[%s780_s25] sm:$0xff]  ;;  %v1968_v14 = vld [vmem:[%s2898_s5 + $0x8] sm:$0xff]  ;;  %s2660_s25 = sand.u32 1, %s2302_s22   ;;  %s1565_s19 = sand.u32 1, %s2467_s3  }
  0x36   : > { %v832_v3 = vunpack.c.l.b16 %v818_v1  ;;  %v807_v4 = vpack.c.bf16 %v806_v2, %v806_v2  ;;  %v844_v19 = vsel %vm836_vm0, %v1968_v14, 0  ;;  %v1967_v22 = vld [vmem:[%s2898_s5] sm:$0xff]  ;;  %s2748_s2 = scalar_lea.sflag [#allocation9], %s1565_s19 }
  0x37   : > { %s795_s29 = scalar_lea.vmem %s2899_s21, %s2523_s16  ;;  %v841_v25 = vsel %vm836_vm0, %v1967_v22, 0  ;;  %s2901_s21 = sld [smem:[#allocation22_spill]]  ;;  %v972_v55 = vld [vmem:[%s2859_s14] sm:$0xff] }
  0x38   : > { %v835_v7 = vpack.c.b16 %v832_v3, %v832_v3  ;;  %v947_v8 = vsel %vm836_vm0, %v807_v4, 0  ;;  %v812_v10 = vld [vmem:[%s795_s29] sm:$0xff]  ;;  %s791_s23 = scalar_lea.vmem %s2900_s1, %s2523_s16  ;;  %917 = vperm.xlu0 %2074, %v907_v17   ;;  %s2325_s1 = smov 120  }
  0x39   : > { %956 = vmatpush.bf16.xpose.msra.mxu2 %v947_v8  ;;  %v813_v12 = vpack.c.bf16 %v812_v10, %v812_v10  ;;  %896 = vmatpush.bf16.xpose.msra.mxu1 %v884_v18  ;;  %v810_v21 = vld [vmem:[%s791_s23] sm:$0xff]  ;;  %s784_s27 = scalar_lea.vmem %s2902_s26, %s2523_s16  ;;  %s1885_s26 = sshll.u32 %s2660_s25, 5 }
  0x3a   : > { %v847_v11 = vsel %vm836_vm0, %v835_v7, 0  ;;  %v811_v23 = vpack.c.bf16 %v810_v21, %v810_v21  ;;  %v808_v30 = vld [vmem:[%s784_s27] sm:$0xff]  ;;  %s2326_s27 = smov 112  }
  0x3b   : > { %854 = vmatpush.bf16.xpose.msra.mxu0 %v847_v11  ;;  %v1013_v16 = vsel %vm836_vm0, %v813_v12, 0  ;;  %v809_v32 = vpack.c.bf16 %v808_v30, %v808_v30  ;;  %v2077_v39 = vld [vmem:[%s2903_s6] ss:$0 sm:$0xff]  ;;  %v1976_v30 = vld [vmem:[%s2854_s9 + $0x8] sm:$0xff] }
  0x3c   : > { %1022 = vmatpush.bf16.xpose.msra.mxu3 %v1013_v16  ;;  %v1038_v60 = vld [vmem:[%s2855_s10] sm:$0xff] }
  0x3d   : > { %s776_s29 = scalar_lea.vmem %s2901_s21, %s2523_s16  ;;  %v1079_v34 = vsel %vm836_vm0, %v809_v32, 0  ;;  %s802_s21 = scalar_lea.vmem %s2865_s20, %s2523_s16 }
  0x3e   : > { %v804_v26 = vld [vmem:[%s776_s29] sm:$0xff]  ;;  %s2875_s16 = sshll.u32 %s2310_s24, 5 }
  0x3f   : > { %v805_v29 = vpack.c.bf16 %v804_v26, %v804_v26  ;;  %s1605_s28 = scalar_lea.hbm %s2863_s18, %s2875_s16 }
  0x40   : > { %1919 = vmatmul.msk.bf16.vlgmr.msra.gmra.mxu2 %vm836_vm0, %v1971_v15  ;;  %922 = vperm.xlu0 %2074, %v908_v24   ;;  %v1039_v24 = vld [vmem:[%s2855_s10 + $0x8] sm:$0xff]  ;;  %s1608_s23 = sshll.u32 %s1605_s28, 4  ;;  %s1609_s23 = int_to_ptr.hbm [resolvable:$true] %s1608_s23 }
  0x41   : > { %1910 = vmatmul.msk.bf16.vlgmr.msra.gmra.mxu1 %vm836_vm0, %v811_v23 }
  0x42   : > { %1088 = vmatpush.bf16.xpose.msrb.mxu1 %v1079_v34 }
  0x43   : > { %855 = vmatpush.bf16.xpose.msra.mxu0 %v844_v19  ;;  %1929 = vmatmul.msk.bf16.vlgmr.msra.gmra.mxu3 %vm836_vm0, %v1973_v20 }
  0x48   : > { %927 = vperm.xlu0 %2074, %v909_v28  }
  0x4b   : > { %856 = vmatpush.bf16.xpose.msra.mxu0 %v841_v25 }
  0x50   : > { %1920 = vmatmul.msk.bf16.gmra.mxu2 %vm836_vm0, %v1972_v27 }
  0x51   : > { %1939 = vmatmul.msk.bf16.vlgmr.msrb.gmra.mxu1 %vm836_vm0, %v1975_v38 }
  0x52   : > { %1901 = vmatmul.msk.bf16.vlgmr.msra.gmra.mxu0 %vm836_vm0, %v805_v29 }
  0x61   : > { %1940 = vmatmul.msk.bf16.gmra.mxu1 %vm836_vm0, %v1976_v30 }
  0x8d   : > { %v984_v63 = vpop.permute.xlu2 %983 }
  0xa2   : > { %v913_v31 = vpop.permute.xlu0 %912 }
  0xaa   : > { %v918_v49 = vpop.permute.xlu0 %917 }
  0xb2   : > { %v923_v2 = vpop.permute.xlu0 %922 }
  0xba   : > { %v928_v17 = vpop.permute.xlu0 %927 }
  0xbe   : > { %v898_v48 = vpop.f32.mrf.mxu1 }
  0xbf   : > { %v899_v51 = vadd.f32 %v2078_v47, %v898_v48  ;;  %v1040_v47 = vld [vmem:[%s2855_s10 + $0x10] sm:$0xff] }
  0xc1   : > { %v1101_v53 = vpack.c.bf16 %v899_v51, %v899_v51 }
  0xc3   : > { %v958_v33 = vpop.f32.mrf.mxu2  ;;  %v1237_v56 = vunpack.c.l.b16 %v1101_v53 }
  0xc4   : > { %v959_v35 = vadd.f32 %v958_v33, %v913_v31 }
  0xc5   : > { %v2614_v58 = vpack.c.b16 %v1237_v56, %v1237_v56 }
  0xc6   : > { %v1102_v36 = vpack.c.bf16 %v959_v35, %v959_v35  ;;  %v900_v59 = vpop.f32.mrf.mxu1  ;;  %v1024_v61 = vpop.f32.mrf.mxu3 }
  0xc7   : > { %1239 = vrot.lane.b32.xlu2 %v2614_v58, %s2325_s1 }
  0xc8   : > { %v1124_v37 = vsel %vm1122_vm1, %v1102_v36, 0 }
  0xc9   : > { %1133 = vmatpush.bf16.msrb.mxu0 %v1124_v37 }
  0xcb   : > { %v960_v50 = vpop.f32.mrf.mxu2 }
  0xcc   : > { %v961_v52 = vadd.f32 %v960_v50, %v918_v49 }
  0xce   : > { %v1103_v54 = vpack.c.bf16 %v961_v52, %v961_v52  ;;  %v1026_v0 = vpop.f32.mrf.mxu3  ;;  %v1090_v23 = vpop.f32.mrf.mxu1 }
  0xcf   : > { %v858_v40 = vpop.f32.mrf.mxu0  ;;  %v1027_v1 = vadd.f32 %v1026_v0, %v984_v63 }
  0xd0   : > { %v2599_v41 = vadd.f32 %v2077_v39, %v858_v40  ;;  %v1210_v57 = vsel %vm1122_vm1, %v1103_v54, 0 }
  0xd1   : > { %1219 = vmatpush.bf16.msra.mxu0 %v1210_v57  ;;  %v1107_v5 = vpack.c.bf16 %v1027_v1, %v1027_v1 }
  0xd2   : > { %v1100_v43 = vpack.c.bf16 %v2599_v41, %v2599_v41 }
  0xd3   : > { %v963_v4 = vpop.f32.mrf.mxu2  ;;  %v1245_v11 = vsel %vm1122_vm1, %v1107_v5, 0 }
  0xd4   : > { %1941 = vmatmul.msk.bf16.vlgmr.msrb.gmra.mxu0 %vm1118_vm2, %v1100_v43  ;;  %v1202_v44 = vunpack.c.l.b16 %v1100_v43  ;;  %v964_v8 = vadd.f32 %v963_v4, %v923_v2 }
  0xd6   : > { %v1203_v45 = vpack.c.b16 %v1202_v44, %v1202_v44  ;;  %v1104_v12 = vpack.c.bf16 %v964_v8, %v964_v8  ;;  %v1092_v36 = vpop.f32.mrf.mxu1 }
  0xd7   : > { %v860_v46 = vpop.f32.mrf.mxu0 }
  0xd8   : > { %1204 = vrot.lane.b32.xlu1 %v1203_v45, %s2325_s1  ;;  %v1336_v16 = vsel %vm1122_vm1, %v1104_v12, 0 }
  0xdb   : > { %v965_v18 = vpop.f32.mrf.mxu2 }
  0xdc   : > { %v966_v20 = vadd.f32 %v965_v18, %v928_v17  ;;  %v975_v17 = vld [vmem:[%s2859_s14 + $0x18] sm:$0xff] }
  0xde   : > { %v1105_v21 = vpack.c.bf16 %v966_v20, %v966_v20  ;;  %v1114_v20 = vld [vmem:[#allocation5] sm:$0xf] }
  0xe0   : > { %978 = vperm.xlu1 %2075, %v972_v55   ;;  %v1441_v26 = vsel %vm1122_vm1, %v1105_v21, 0  ;;  %v1974_v55 = vld [vmem:[#allocation2 + $0x8] sm:$0xff]  ;;  %v1315_v21 = vsel %vm1122_vm1, %v1114_v20, 0 }
  0xe1   : > { %1930 = vmatmul.msk.bf16.gmra.mxu3 %vm836_vm0, %v1974_v55  ;;  %1324 = vmatpush.bf16.msrb.mxu0 %v1315_v21 }
  0xe8   : > { %1330 = vrot.lane.b32.xlu1 %v1203_v45, %s2326_s27 }
  0xf0   : > { %1435 = vrot.lane.b32.xlu1 %v1203_v45, %s2327_s30 }
  0xf8   : > { %1044 = vperm.xlu1 %2075, %v1038_v60  }
 0x121   : > { %v1240_v22 = vpop.permute.xlu2 %1239 }
 0x14a   : > { %v1205_v62 = vpop.permute.xlu1 %1204 }
 0x14b   : > { %1944 = vmatmul.msk.bf16.vlgmr.msra.gmra.mxu0 %vm1118_vm2, %v1205_v62 }
 0x151   : > { %v1135_v3 = vpop.f32.mrf.mxu0 }
 0x152   : > { %v979_v6 = vpop.permute.xlu1 %978  ;;  %v1139_v7 = vsel %vm1118_vm2, %v1135_v3, -inf }
 0x153   : > { %v1025_v9 = vadd.f32 %v1024_v61, %v979_v6  ;;  %1140 = vmax.xlane.f32.xlu2 %v1139_v7  ;;  %v1115_v61 = vld [vmem:[#allocation5 + $0x4] sm:$0xf]  ;;  %v1095_v6 = vpop.f32.mrf.mxu1 }
 0x154   : > { %v1296_v62 = vsel %vm1122_vm1, %v1115_v61, 0 }
 0x155   : > { %v1106_v10 = vpack.c.bf16 %v1025_v9, %v1025_v9  ;;  %1305 = vmatpush.bf16.msra.mxu1 %v1296_v62 }
 0x157   : > { %v1154_v13 = vsel %vm1122_vm1, %v1106_v10, 0 }
 0x158   : > { %1163 = vmatpush.bf16.msrb.mxu2 %v1154_v13 }
 0x159   : > { %v1137_v14 = vpop.f32.mrf.mxu0 }
 0x15a   : > { %v1331_v15 = vpop.permute.xlu1 %1330 }
 0x15b   : > { %1942 = vmatmul.msk.bf16.vlgmr.msrb.gmra.mxu2 %vm1118_vm2, %v1101_v53 }
 0x15c   : > { %1254 = vmatpush.bf16.msra.mxu2 %v1245_v11  ;;  %v1041_v11 = vld [vmem:[%s2855_s10 + $0x18] sm:$0xff] }
 0x160   : > { %1345 = vmatpush.bf16.msrb.mxu2 %v1336_v16  ;;  %v974_v16 = vld [vmem:[%s2859_s14 + $0x10] sm:$0xff] }
 0x162   : > { %v1436_v19 = vpop.permute.xlu1 %1435 }
 0x16a   : > { %v1045_v25 = vpop.permute.xlu1 %1044 }
 0x16b   : > { %v1091_v27 = vadd.f32 %v1090_v23, %v1045_v25  ;;  %1945 = vmatmul.msk.bf16.vlgmr.msra.gmra.mxu2 %vm1118_vm2, %v1240_v22  ;;  %1049 = vperm.xlu2 %2076, %v1039_v24   ;;  %v1029_v24 = vpop.f32.mrf.mxu3 }
 0x16c   : > { %1450 = vmatpush.bf16.msra.mxu2 %v1441_v26 }
 0x16d   : > { %v1110_v28 = vpack.c.bf16 %v1091_v27, %v1091_v27 }
 0x16f   : > { %v1185_v29 = vsel %vm1118_vm2, %v1110_v28, 0 }
 0x170   : > { %1194 = vmatpush.bf16.xpose.msrb.mxu3 %v1185_v29 }
 0x173   : > { %v1031_v30 = vpop.f32.mrf.mxu3 }
 0x17b   : > { %1949 = vmatmul.msk.bf16.vlgmr.msrb.gmra.mxu2 %vm1118_vm2, %v1331_v15 }
 0x18b   : > { %1953 = vmatmul.msk.bf16.vlgmr.msra.gmra.mxu2 %vm1118_vm2, %v1436_v19 }
 0x1c6   : > { %v1141_v31 = vpop.xlane.xlu2 %1140 }
 0x1c7   : > { %v1142_v32 = vsub.f32 %v1135_v3, %v1141_v31 }
 0x1c8   : > { %v1221_v33 = vpop.f32.mrf.mxu0 }
 0x1c9   : > { %v1143_v34 = vmul.f32 1.442695, %v1142_v32  ;;  %v1225_v35 = vsel %vm1118_vm2, %v1221_v33, -inf }
 0x1ca   : > { %1226 = vmax.xlane.f32.xlu0 %v1225_v35 }
 0x1cb   : > { %2080 = vpow2.f32 %v1143_v34 }
 0x1ce   : > { %v1050_v37 = vpop.permute.xlu2 %1049 }
 0x1cf   : > { %v1093_v38 = vadd.f32 %v1092_v36, %v1050_v37 }
 0x1d0   : > { %v1223_v39 = vpop.f32.mrf.mxu0 }
 0x1d1   : > { %v2081_v40 = vpop.eup %2080  ;;  %v1111_v42 = vpack.c.bf16 %v1093_v38, %v1093_v38 }
 0x1d2   : > { %v1145_v43 = vsel %vm1118_vm2, %v2081_v40, 0.0 }
 0x1d3   : > { %v1276_v44 = vsel %vm1118_vm2, %v1111_v42, 0  ;;  %1146 = vadd.xlane.f32.xlu1 %v1145_v43 }
 0x1d4   : > { %1285 = vmatpush.bf16.xpose.msra.mxu3 %v1276_v44 }
 0x1de   : > { %v2643_v45 = vpop.f32.mrf.mxu2 }
 0x1df   : > { %v1169_v36 = vsel %vm1118_vm2, %v2643_v45, -inf }
 0x1e6   : > { %v1167_v46 = vpop.f32.mrf.mxu2 }
 0x1ec   : > { %1054 = vperm.xlu1 %2075, %v1040_v47  }
 0x1ee   : > { %v2648_v48 = vpop.f32.mrf.mxu2 }
 0x1ef   : > { %v1260_v60 = vsel %vm1118_vm2, %v2648_v48, -inf }
 0x1f6   : > { %v1258_v49 = vpop.f32.mrf.mxu2 }
 0x1fe   : > { %v1347_v50 = vpop.f32.mrf.mxu2 }
 0x1ff   : > { %v1351_v51 = vsel %vm1118_vm2, %v1347_v50, -inf }
 0x200   : > { %1352 = vmax.xlane.f32.xlu2 %v1351_v51 }
 0x206   : > { %v1349_v52 = vpop.f32.mrf.mxu2 }
 0x20e   : > { %v2651_v53 = vpop.f32.mrf.mxu2 }
 0x20f   : > { %v1456_v5 = vsel %vm1118_vm2, %v2651_v53, -inf }
 0x216   : > { %v1454_v54 = vpop.f32.mrf.mxu2 }
 0x218   : > { %1362 = vrot.lane.b32.xlu2 %v2614_v58, %s2326_s27  ;;  %s2666_s27 = scalar_lea.vmem [#allocation8], %s1885_s26 }
 0x219   : > { %s1606_s1 = sshll.u32 %s2666_s27, 4  ;;  %s1607_s1 = int_to_ptr.vmem [resolvable:$true] %s1606_s1 }
 0x23d   : > { %v1227_v56 = vpop.xlane.xlu0 %1226 }
 0x23e   : > { %v1228_v57 = vsub.f32 %v1221_v33, %v1227_v56 }
 0x240   : > { %v1229_v59 = vmul.f32 1.442695, %v1228_v57 }
 0x241   : > { %1261 = vmax.xlane.f32.xlu2 %v1260_v60 }
 0x242   : > { %2082 = vpow2.f32 %v1229_v59 }
 0x246   : > { %v1147_v63 = vpop.xlane.xlu1 %1146 }
 0x247   : > { %2084 = vrcp.f32 %v1147_v63 }
 0x248   : > { %v2083_v0 = vpop.eup %2082 }
 0x249   : > { %v1231_v1 = vsel %vm1118_vm2, %v2083_v0, 0.0 }
 0x24a   : > { %1232 = vadd.xlane.f32.xlu0 %v1231_v1 }
 0x24d   : > { %v2085_v2 = vpop.eup %2084 }
 0x24e   : > { %v1149_v3 = vmul.f32 %v2085_v2, %v2081_v40 }
 0x250   : > { %1540 = vst.msk [vmem:[%s2666_s27] sm:$0xff] %vm1118_vm2, %v1149_v3  ;;  %v1180_v4 = vpack.c.bf16 %v1149_v3, %v1149_v3 }
 0x252   : > { %1943 = vmatmul.msk.bf16.vlgmr.msrb.gmra.mxu3 %vm1118_vm2, %v1180_v4  ;;  %1457 = vmax.xlane.f32.xlu0 %v1456_v5 }
 0x259   : > { %1555 = vrot.lane.b32.xlu2 %v2599_v41, %s2328_s0  ;;  %s2186_s0 = sshra.s32 %s1609_s23, 4  ;;  %s2187_s0 = int_to_ptr.hbm [resolvable:$true] %s2186_s0 }
 0x25a   : > { %p2193_p5 = scmp.lt.s32.totalorder %s2187_s0, %s2863_s18 }
 0x25e   : > { %v1055_v7 = vpop.permute.xlu1 %1054 }
 0x25f   : > { %v1096_v8 = vadd.f32 %v1095_v6, %v1055_v7 }
 0x261   : > { %v1112_v9 = vpack.c.bf16 %v1096_v8, %v1096_v8 }
 0x263   : > { %v1399_v10 = vsel %vm1118_vm2, %v1112_v9, 0 }
 0x264   : > { %1408 = vmatpush.bf16.xpose.msrb.mxu1 %v1399_v10 }
 0x266   : > { %1059 = vperm.xlu0 %2074, %v1041_v11  }
 0x273   : > { %v1353_v12 = vpop.xlane.xlu2 %1352 }
 0x274   : > { %v1354_v13 = vsub.f32 %v1347_v50, %v1353_v12 }
 0x276   : > { %v1355_v14 = vmul.f32 1.442695, %v1354_v13 }
 0x278   : > { %2086 = vpow2.f32 %v1355_v14 }
 0x27b   : > { %v1363_v18 = vpop.permute.xlu2 %1362 }
 0x27e   : > { %v2087_v15 = vpop.eup %2086 }
 0x27f   : > { %v1357_v41 = vsel %vm1118_vm2, %v2087_v15, 0.0 }
 0x290   : > { %1358 = vadd.xlane.f32.xlu0 %v1357_v41 }
 0x2a4   : > { %988 = vperm.xlu0 %2074, %v974_v16   ;;  %v1116_v16 = vld [vmem:[#allocation5 + $0x8] sm:$0xf] }
 0x2ac   : > { %993 = vperm.xlu0 %2074, %v975_v17  }
 0x2b4   : > { %v2685_v19 = vpop.xlane.xlu2 %1261  ;;  %1467 = vrot.lane.b32.xlu0 %v2614_v58, %s2327_s30  ;;  %s2192_s30 = scalar_lea.hbm %s2863_s18, 64 }
 0x2b5   : > { %v1263_v10 = vsub.f32 %v2648_v48, %v2685_v19 }
 0x2b7   : > { %v1264_v13 = vmul.f32 1.442695, %v1263_v10 }
 0x2bc   : > { %v1556_v22 = vpop.permute.xlu2 %1555 }
 0x2bd   : > { %1559 = vst.msk [vmem:[%s802_s21] sm:$0xff] %vm1558_vm3, %v1556_v22  ;;  %v1233_v23 = vpop.xlane.xlu0 %1232  ;;  %s2188_s21 = scalar_lea.hbm %s2187_s0, 32 }
 0x2be   : > { %2088 = vrcp.f32 %v1233_v23  ;;  %p2189_p1 = scmp.ne.s32.totalorder %s2187_s0, %s2188_s21  ;;  %p2194_p6 = scmp.lt.s32.totalorder %s2192_s30, %s2188_s21 }
 0x2c0   : > { %p2190_p2 = pnand %p2189_p1, %p2479_p4  ;;  %p2195_p7 = por %p2194_p6, %p2193_p5 }
 0x2c2   : > { %p2191_p3 = pneg %p2190_p2 }
 0x2c4   : > { %v2089_v25 = vpop.eup %2088  ;;  %p2196_p9 = pnand %p2195_p7, %p2191_p3 }
 0x2c5   : > { %v1235_v26 = vmul.f32 %v2089_v25, %v2083_v0  ;;  %v1458_v27 = vpop.xlane.xlu0 %1457 }
 0x2c6   : > { %v1459_v58 = vsub.f32 %v2651_v53, %v1458_v27  ;;  %v1097_v53 = vpop.f32.mrf.mxu1 }
 0x2c7   : > { %v1271_v28 = vpack.c.bf16 %v1235_v26, %v1235_v26  ;;  %1541 = vst.msk [vmem:[%s2666_s27 + $0x8] sm:$0xff] %vm1118_vm2, %v1235_v26 }
 0x2c8   : > { %v1460_v29 = vmul.f32 1.442695, %v1459_v58 }
 0x2c9   : > { %1946 = vmatmul.msk.bf16.vlgmr.msra.gmra.mxu3 %vm1118_vm2, %v1271_v28 }
 0x2ca   : > { %2090 = vpow2.f32 %v1460_v29 }
 0x2d0   : > { %v2091_v31 = vpop.eup %2090 }
 0x2d1   : > { %v1462_v32 = vsel %vm1118_vm2, %v2091_v31, 0.0 }
 0x2d2   : > { %1463 = vadd.xlane.f32.xlu1 %v1462_v32 }
 0x2d5   : > { %v1196_v33 = vpop.f32.mrf.mxu3 }
 0x2d6   : > { %v1200_v34 = vpack.c.bf16 %v1196_v33, %v1196_v33 }
 0x2d8   : > { %1948 = vmatmul.msk.bf16.vlgmr.msrb.gmra.mxu0 %vm1118_vm2, %v1200_v34  ;;  %v1060_v37 = vpop.permute.xlu0 %1059 }
 0x2d9   : > { %v1098_v55 = vadd.f32 %v1097_v53, %v1060_v37 }
 0x2db   : > { %v1113_v56 = vpack.c.bf16 %v1098_v55, %v1098_v55 }
 0x2dd   : > { %v1198_v35 = vpop.f32.mrf.mxu3  ;;  %v1504_v62 = vsel %vm1118_vm2, %v1113_v56, 0 }
 0x2de   : > { %1170 = vmax.xlane.f32.xlu0 %v1169_v36 }
 0x303   : > { %v1359_v38 = vpop.xlane.xlu0 %1358 }
 0x304   : > { %2092 = vrcp.f32 %v1359_v38 }
 0x30a   : > { %v2093_v39 = vpop.eup %2092 }
 0x30b   : > { %v1361_v40 = vmul.f32 %v2093_v39, %v2087_v15 }
 0x30d   : > { %1542 = vst.msk [vmem:[%s2666_s27 + $0x10] sm:$0xff] %vm1118_vm2, %v1361_v40  ;;  %v1394_v1 = vpack.c.bf16 %v1361_v40, %v1361_v40 }
 0x316   : > { %v989_v42 = vpop.permute.xlu0 %988 }
 0x317   : > { %v1030_v43 = vadd.f32 %v1029_v24, %v989_v42 }
 0x319   : > { %v1108_v44 = vpack.c.bf16 %v1030_v43, %v1030_v43 }
 0x31b   : > { %v1368_v46 = vsel %vm1122_vm1, %v1108_v44, 0 }
 0x31c   : > { %1377 = vmatpush.bf16.msrb.mxu3 %v1368_v46 }
 0x31e   : > { %v994_v47 = vpop.permute.xlu0 %993 }
 0x31f   : > { %v1032_v49 = vadd.f32 %v1031_v30, %v994_v47  ;;  %1950 = vmatmul.msk.bf16.vlgmr.msrb.gmra.mxu3 %vm1118_vm2, %v1363_v18  ;;  %v1117_v18 = vld [vmem:[#allocation5 + $0xc] sm:$0xf] }
 0x320   : > { %v1524_v20 = vsel %vm1122_vm1, %v1117_v18, 0 }
 0x321   : > { %v1109_v50 = vpack.c.bf16 %v1032_v49, %v1032_v49 }
 0x323   : > { %v1473_v51 = vsel %vm1122_vm1, %v1109_v50, 0 }
 0x324   : > { %1482 = vmatpush.bf16.msra.mxu3 %v1473_v51 }
 0x326   : > { %v1468_v52 = vpop.permute.xlu0 %1467 }
 0x32f   : > { %1954 = vmatmul.msk.bf16.vlgmr.msra.gmra.mxu3 %vm1118_vm2, %v1468_v52 }
 0x345   : > { %v1464_v54 = vpop.xlane.xlu1 %1463 }
 0x346   : > { %2094 = vrcp.f32 %v1464_v54 }
 0x34c   : > { %v2095_v57 = vpop.eup %2094  ;;  %v1287_v59 = vpop.f32.mrf.mxu3 }
 0x34d   : > { %v1466_v60 = vmul.f32 %v2095_v57, %v2091_v31  ;;  %v1291_v61 = vpack.c.bf16 %v1287_v59, %v1287_v59 }
 0x34f   : > { %1543 = vst.msk [vmem:[%s2666_s27 + $0x18] sm:$0xff] %vm1118_vm2, %v1466_v60  ;;  %1947 = vmatmul.msk.bf16.vlgmr.msra.gmra.mxu1 %vm1118_vm2, %v1291_v61  ;;  %v1499_v3 = vpack.c.bf16 %v1466_v60, %v1466_v60 }
 0x350   : > { %1513 = vmatpush.bf16.xpose.msra.mxu1 %v1504_v62 }
 0x351   : > { %v1171_v6 = vpop.xlane.xlu0 %1170 }
 0x352   : > { %v1172_v7 = vsub.f32 %v2643_v45, %v1171_v6  ;;  %v1419_v45 = vsel %vm1122_vm1, %v1116_v16, 0 }
 0x353   : > { %1428 = vmatpush.bf16.msra.mxu0 %v1419_v45 }
 0x354   : > { %v1289_v63 = vpop.f32.mrf.mxu3  ;;  %v1173_v9 = vmul.f32 1.442695, %v1172_v7 }
 0x355   : > { %v2712_v0 = vpop.f32.mrf.mxu0 }
 0x356   : > { %2096 = vpow2.f32 %v1173_v9 }
 0x357   : > { %2098 = vpow2.f32 %v1264_v13  ;;  %1533 = vmatpush.bf16.msrb.mxu0 %v1524_v20 }
 0x35c   : > { %v2721_v14 = vpop.eup %2096 }
 0x35d   : > { %v1328_v2 = vpop.f32.mrf.mxu0  ;;  %v1175_v41 = vsel %vm1118_vm2, %v2721_v14, 0.0  ;;  %v2099_v17 = vpop.eup %2098 }
 0x35e   : > { %v1266_v48 = vsel %vm1118_vm2, %v2099_v17, 0.0 }
 0x35f   : > { %1951 = vmatmul.msk.bf16.vlgmr.msrb.gmra.mxu1 %vm1118_vm2, %v1394_v1 }
 0x36f   : > { %1955 = vmatmul.msk.bf16.vlgmr.msra.gmra.mxu1 %vm1118_vm2, %v1499_v3 }
 0x3a2   : > { %v1379_v4 = vpop.f32.mrf.mxu3 }
 0x3a3   : > { %v1383_v5 = vsel %vm1118_vm2, %v1379_v4, -inf }
 0x3a4   : > { %1384 = vmax.xlane.f32.xlu1 %v1383_v5 }
 0x3aa   : > { %v1381_v8 = vpop.f32.mrf.mxu3 }
 0x3b2   : > { %v1484_v11 = vpop.f32.mrf.mxu3 }
 0x3b3   : > { %v1488_v12 = vsel %vm1118_vm2, %v1484_v11, -inf }
 0x3b4   : > { %1489 = vmax.xlane.f32.xlu1 %v1488_v12 }
 0x3ba   : > { %v1486_v15 = vpop.f32.mrf.mxu3 }
 0x3bc   : > { %1176 = vadd.xlane.f32.xlu1 %v1175_v41 }
 0x3c4   : > { %1267 = vadd.xlane.f32.xlu1 %v1266_v48 }
 0x3cc   : > { %v2727_v19 = vpop.f32.mrf.mxu1 }
 0x3d4   : > { %v1309_v21 = vpop.f32.mrf.mxu1 }
 0x3dc   : > { %v1410_v22 = vpop.f32.mrf.mxu1 }
 0x3dd   : > { %v1414_v23 = vpack.c.bf16 %v1410_v22, %v1410_v22 }
 0x3df   : > { %1952 = vmatmul.msk.bf16.vlgmr.msra.gmra.mxu0 %vm1118_vm2, %v1414_v23 }
 0x3e4   : > { %v1412_v24 = vpop.f32.mrf.mxu1 }
 0x3ec   : > { %v1515_v25 = vpop.f32.mrf.mxu1 }
 0x3ed   : > { %v1519_v26 = vpack.c.bf16 %v1515_v25, %v1515_v25 }
 0x3ef   : > { %1956 = vmatmul.msk.bf16.vlgmr.msrb.gmra.mxu0 %vm1118_vm2, %v1519_v26 }
 0x3f4   : > { %v1517_v27 = vpop.f32.mrf.mxu1 }
 0x417   : > { %v1385_v58 = vpop.xlane.xlu1 %1384 }
 0x418   : > { %v1386_v28 = vsub.f32 %v1379_v4, %v1385_v58 }
 0x41a   : > { %v1387_v29 = vmul.f32 1.442695, %v1386_v28 }
 0x41c   : > { %2100 = vpow2.f32 %v1387_v29 }
 0x422   : > { %v2732_v30 = vpop.eup %2100 }
 0x423   : > { %v1389_v31 = vsel %vm1118_vm2, %v2732_v30, 0.0 }
 0x424   : > { %1390 = vadd.xlane.f32.xlu1 %v1389_v31 }
 0x427   : > { %v1490_v32 = vpop.xlane.xlu1 %1489 }
 0x428   : > { %v1491_v33 = vsub.f32 %v1484_v11, %v1490_v32 }
 0x42a   : > { %v1492_v34 = vmul.f32 1.442695, %v1491_v33 }
 0x42c   : > { %2102 = vpow2.f32 %v1492_v34 }
 0x42f   : > { %v1177_v35 = vpop.xlane.xlu1 %1176 }
 0x430   : > { %2104 = vrcp.f32 %v1177_v35 }
 0x432   : > { %v2744_v36 = vpop.eup %2102 }
 0x433   : > { %v1494_v37 = vsel %vm1118_vm2, %v2744_v36, 0.0 }
 0x434   : > { %1495 = vadd.xlane.f32.xlu0 %v1494_v37 }
 0x435   : > { %2199 = shalt.err (!%p2196_p9)
}
 0x436   : > { %s2876_s19 = smov 128   ;;  %s2877_s16 = smov 8   ;;  %v2105_v38 = vpop.eup %2104  ;;  %v1327_v47 = vadd.f32 %v2712_v0, %v2727_v19 }
 0x437   : > { %1988 = dma.vmem_to_hbm [thread:$0]  (%p2479_p4), %s1607_s1, 512, %s1609_s23, %s2748_s2, %s2876_s19, %s2876_s19, %s2877_s16   ;;  %v1179_v39 = vmul.f32 %v2105_v38, %v2721_v14  ;;  %v1268_v40 = vpop.xlane.xlu1 %1267 }
 0x438   : > { %2106 = vrcp.f32 %v1268_v40  ;;  %s2767_s0 = scalar_lea.vmem [#allocation10], %s1885_s26  ;;  %s1960_s1 = sshll.u32 %s2310_s24, 3 }
 0x439   : > { %1544 = vst.msk [vmem:[%s2767_s0] sm:$0xff] %vm1118_vm2, %v1179_v39  ;;  %s1884_s23 = sshll.u32 %s2660_s25, 3  ;;  %s1589_s26 = scalar_lea.hbm %s2862_s17, %s1960_s1 }
 0x43a   : > { %s2904_s29 = sld [smem:[#allocation29_spill]]  ;;  %s746_s28 = scalar_lea.vmem [#allocation7], %s1884_s23 }
 0x43b   : > { %s1591_s19 = sshll.u32 %s746_s28, 4  ;;  %s1593_s16 = sshll.u32 %s1589_s26, 4  ;;  %s1592_s19 = int_to_ptr.vmem [resolvable:$true] %s1591_s19  ;;  %s1594_s16 = int_to_ptr.hbm [resolvable:$true] %s1593_s16 }
 0x43c   : > { %s1561_s5 = scalar_lea.sflag [#allocation4], %s2660_s25  ;;  %s2214_s6 = sshra.s32 %s1594_s16, 4  ;;  %s2215_s6 = int_to_ptr.hbm [resolvable:$true] %s2214_s6 }
 0x43d   : > { %s2216_s1 = scalar_lea.hbm %s2215_s6, 8  ;;  %s2220_s23 = scalar_lea.hbm %s2862_s17, 16 }
 0x43e   : > { %v2107_v42 = vpop.eup %2106  ;;  %p2217_p10 = scmp.ne.s32.totalorder %s2215_s6, %s2216_s1  ;;  %p2221_p13 = scmp.lt.s32.totalorder %s2215_s6, %s2862_s17 }
 0x43f   : > { %v1270_v43 = vmul.f32 %v2107_v42, %v2099_v17  ;;  %p2222_p0 = scmp.lt.s32.totalorder %s2220_s23, %s2216_s1 }
 0x440   : > { %v2079_v50 = vld [vmem:[%s2904_s29] ss:$0 sm:$0xff]  ;;  %p2218_p11 = pnand %p2217_p10, %p2479_p4 }
 0x441   : > { %1545 = vst.msk [vmem:[%s2767_s0 + $0x8] sm:$0xff] %vm1118_vm2, %v1270_v43  ;;  %p2223_p1 = por %p2222_p0, %p2221_p13 }
 0x442   : > { %p2219_p12 = pneg %p2218_p11 }
 0x444   : > { %p2224_p2 = pnand %p2223_p1, %p2219_p12 }
 0x45c   : > { %v1430_v44 = vpop.f32.mrf.mxu0 }
 0x45d   : > { %v1434_v49 = vadd.f32 %v1430_v44, %v1327_v47 }
 0x464   : > { %v1432_v46 = vpop.f32.mrf.mxu0 }
 0x46c   : > { %v1535_v51 = vpop.f32.mrf.mxu0 }
 0x46d   : > { %v1539_v52 = vadd.f32 %v1535_v51, %v1434_v49 }
 0x46f   : > { %v1552_v53 = vadd.f32 %v2079_v50, %v1539_v52 }
 0x471   : > { %1553 = vst.msk [vmem:[%s746_s28] sm:$0xff] %vm836_vm0, %v1552_v53 }
 0x472   : > { %2227 = shalt.err (!%p2224_p2)
}
 0x473   : > { %1987 = dma.vmem_to_hbm [thread:$0]  (%p2479_p4), %s1592_s19, 128, %s1594_s16, %s1561_s5  }
 0x474   : > { %v1537_v54 = vpop.f32.mrf.mxu0  ;;  %s2905_s6 = sshll.u32 %s2310_s24, 5  ;;  %s2906_s29 = sld [smem:[#allocation30_spill]] }
 0x475   : > { %s1624_s1 = sshll.u32 %s2767_s0, 4  ;;  %s1625_s1 = int_to_ptr.vmem [resolvable:$true] %s1624_s1 }
 0x47a   : > { %s1623_s28 = scalar_lea.hbm %s2906_s29, %s2905_s6  ;;  %s2248_s3 = scalar_lea.hbm %s2906_s29, 64 }
 0x47b   : > { %s1626_s21 = sshll.u32 %s1623_s28, 4  ;;  %s1627_s21 = int_to_ptr.hbm [resolvable:$true] %s1626_s21 }
 0x47c   : > { %s2242_s5 = sshra.s32 %s1627_s21, 4  ;;  %s2243_s5 = int_to_ptr.hbm [resolvable:$true] %s2242_s5 }
 0x47d   : > { %s2244_s16 = scalar_lea.hbm %s2243_s5, 32  ;;  %p2249_p7 = scmp.lt.s32.totalorder %s2243_s5, %s2906_s29 }
 0x47e   : > { %p2245_p3 = scmp.ne.s32.totalorder %s2243_s5, %s2244_s16  ;;  %p2250_p9 = scmp.lt.s32.totalorder %s2248_s3, %s2244_s16 }
 0x480   : > { %p2246_p5 = pnand %p2245_p3, %p2479_p4  ;;  %p2251_p10 = por %p2250_p9, %p2249_p7 }
 0x482   : > { %p2247_p6 = pneg %p2246_p5 }
 0x484   : > { %p2252_p11 = pnand %p2251_p10, %p2247_p6 }
 0x497   : > { %v1391_v55 = vpop.xlane.xlu1 %1390 }
 0x498   : > { %2108 = vrcp.f32 %v1391_v55 }
 0x49e   : > { %v2109_v56 = vpop.eup %2108 }
 0x49f   : > { %v1393_v57 = vmul.f32 %v2109_v56, %v2732_v30 }
 0x4a1   : > { %1546 = vst.msk [vmem:[%s2767_s0 + $0x10] sm:$0xff] %vm1118_vm2, %v1393_v57 }
 0x4a7   : > { %v1496_v59 = vpop.xlane.xlu0 %1495 }
 0x4a8   : > { %2110 = vrcp.f32 %v1496_v59 }
 0x4ae   : > { %v2111_v60 = vpop.eup %2110 }
 0x4af   : > { %v1498_v61 = vmul.f32 %v2111_v60, %v2744_v36 }
 0x4b1   : > { %1547 = vst.msk [vmem:[%s2767_s0 + $0x18] sm:$0xff] %vm1118_vm2, %v1498_v61 }
 0x4b2   : > { %2255 = shalt.err (!%p2252_p11)
}
 0x4b3   : > { %s2907_s0 = smov 8   ;;  %s2908_s26 = smov 128  }
 0x4b4   : > { %1989 = dma.vmem_to_hbm [thread:$0]  (%p2479_p4), %s1625_s1, 512, %s1627_s21, %s2748_s2, %s2908_s26, %s2908_s26, %s2907_s0  }
 0x4b5 PF: > { %s2909_s6 = sld [smem:[#allocation18_spill]] }
 0x4b6   : > { %s2910_s25 = sld [smem:[#allocation15_spill]] }
 0x4bb   : > { %p2014_p12 = scmp.ge.s32.totalorder %s2909_s6, 2 }
 0x4bc   : > { %s1644_s28 = sand.u32 1, %s2910_s25  }
 0x4bd   : > { %p2001_p13 = pnand %p2014_p12, %p2488_p8  ;;  %s1645_s5 = scalar_lea.sflag [#allocation4], %s1644_s28 }
 0x4bf   : > { %p2002_p0 = pneg %p2001_p13 }
 0x4c1   : > { %2289 = dma.done.wait (%p2002_p0), %s1645_s5, 128  }
 0x4c2   : > { %2291 = vsyncadd (%p2002_p0), %s1645_s5, 4294967168  ;;  %s2912_s16 = sadd.s32 4294967294, %s2909_s6  }
 0x4c3   : > { %s1654_s4 = sand.u32 1, %s2912_s16  }
 0x4c4   : > { %s1655_s24 = scalar_lea.sflag [#allocation9], %s1654_s4 }
 0x4c5   : > { %2293 = dma.done.wait (%p2002_p0), %s1655_s24, 1024  }
 0x4c6   : > { %2295 = vsyncadd (%p2002_p0), %s1655_s24, 4294966272  ;;  %s39_s25 = sadd.s32 1, %s2909_s6   ;;  %s2913_s2 = sld [smem:[#allocation16_spill]] }
 0x4c7   : > { %p36_p4 = scmp.ge.s32.totalorder %s39_s25, 4   ;;  %s2914_s23 = sld [smem:[#allocation21_spill]] }
 0x4c8   : > { %s2915_s24 = sld [smem:[#allocation17_spill]]  ;;  %s2917_s1 = smov %s2302_s22 }
 0x4c9   : > { %s2916_s21 = sld [smem:[#allocation19_spill]] }
 0x4cb   :  { %38 = sbr.rel (!%p36_p4) target bundleno = 18 (0x12), region = 188 }
 0x4cc   : > { %s2918_s22 = smov %s2913_s2 }
 0x4cf   : > { %s2919_s2 = smov %s2916_s21 }
 0x4d0   :  { %1681 = vsyncpa [#allocation3], 1 }
 0x4d1   :  { %1683 = vsyncpa [#allocation3 + $0x1], 1 }
 0x4d2   :  { %1684 = vsyncpa [#allocation6], 1 }
 0x4d3   :  { %1685 = vsyncpa [#allocation4], 1 }
 0x4d4   :  { %1687 = vsyncpa [#allocation4 + $0x1], 1 }
 0x4d5   :  { %1688 = vsyncpa [#allocation9], 1 }
 0x4d6   :  { %1690 = vsyncpa [#allocation9 + $0x1], 1 }

</bundles_post_ra>
